<compile_context>
chip_gen: v5e
topology: v5e:2x2
jax: 0.10.0
libtpu: 0.0.40
codegen_flags: <defaults>
</compile_context>

<pallas_src>
import math

import jax
import jax.numpy as jnp
from jax.experimental import pallas as pl
from jax.experimental.pallas import tpu as pltpu


def _make_kernel(num_heads: int, d_k: int, compute_dtype, approx_recip: bool):
    eps = 1e-5                      # torch.nn.LayerNorm default
    D = num_heads * d_k

    def kernel(xq_ref, xkv_ref, maskb_ref,
               ln1w_ref, ln1b_ref,
               wq_ref, bq_ref, wkv_ref, bkv_ref,
               wo_ref, bo_ref,
               ln2w_ref, ln2b_ref,
               w1_ref, b1_ref, w2_ref, b2_ref,
               o_ref,
               kh_ref, vh_ref):
        xq = xq_ref[0]                   # (TQ, D) f32 : query rows + residual stream
        TQ = xq.shape[0]
        S = xkv_ref.shape[1]
        H = num_heads

        ln1w = ln1w_ref[...]
        ln1b = ln1b_ref[...]

        def layernorm(v, w, b):          # f32 statistics (biased variance, eps=1e-5)
            mu = jnp.mean(v, axis=-1, keepdims=True)
            var = jnp.mean((v - mu) ** 2, axis=-1, keepdims=True)
            return (v - mu) * jax.lax.rsqrt(var + eps) * w + b

        def to_heads(t, n):              # (n, H*d_k) f32 -> (H, n, d_k) compute dtype
            t = t.reshape(n, H, d_k)
            return pltpu.einshape("nhd->hnd", t).astype(compute_dtype)

        # ---- K / V: computed ONCE per batch (qi == 0) into persistent VMEM
        #      scratch; every query tile of this batch reuses it. ----
        @pl.when(pl.program_id(1) == 0)
        def _():
            xkv = xkv_ref[0].astype(jnp.float32)                        # (S, D)
            xn_kv = layernorm(xkv, ln1w, ln1b).astype(compute_dtype)
            kv = jnp.dot(xn_kv, wkv_ref[...],
                         preferred_element_type=jnp.float32) + bkv_ref[...]   # (S, 2D)
            kh_ref[...] = to_heads(kv[:, :D], S)                        # (H, S, d_k)
            vh_ref[...] = to_heads(kv[:, D:], S)                        # (H, S, d_k)

        # ---- sublayer 0: multi-head self-attention on LN1(x) ----
        xn_q = layernorm(xq, ln1w, ln1b).astype(compute_dtype)
        # 1/sqrt(d_k) is pre-folded into wq / bq in the wrapper.
        q = jnp.dot(xn_q, wq_ref[...],
                    preferred_element_type=jnp.float32) + bq_ref[...]    # (TQ, D)
        qh = to_heads(q, TQ)                                             # (H, TQ, d_k)

        # Batched-over-heads attention (two MXU streams, no per-head loop).
        s = jnp.einsum("hqd,hkd->hqk", qh, kh_ref[...],
                       preferred_element_type=jnp.float32)               # (H, TQ, S)
        s = s + maskb_ref[0]                       # additive mask bias (1, S) bcast
        m = jnp.max(s, axis=-1, keepdims=True)
        e = jnp.exp(s - m)
        p = e * pl.reciprocal(jnp.sum(e, axis=-1, keepdims=True), approx=approx_recip)

        ctx = jnp.einsum("hqk,hkd->hqd", p.astype(compute_dtype), vh_ref[...],
                         preferred_element_type=jnp.float32)             # (H, TQ, d_k)
        # Head re-interleave: XLU relayout + one full-K (TQ,D)@(D,D) matmul.
        ctx = ctx.astype(compute_dtype)
        attn_in = pltpu.einshape("hqd->qhd", ctx).reshape(TQ, D)         # (TQ, D)
        attn = jnp.dot(attn_in, wo_ref[...],
                       preferred_element_type=jnp.float32) + bo_ref[...]

        # TODO(synk): dropout omitted (inference / p=0 semantics).
        x1 = xq + attn

        # ---- sublayer 1: position-wise feed-forward on LN2(x1) ----
        xn2 = layernorm(x1, ln2w_ref[...], ln2b_ref[...]).astype(compute_dtype)
        h1 = jnp.dot(xn2, w1_ref[...],
                     preferred_element_type=jnp.float32) + b1_ref[...]
        h1 = jnp.maximum(h1, 0.0).astype(compute_dtype)
        ff = jnp.dot(h1, w2_ref[...],
                     preferred_element_type=jnp.float32) + b2_ref[...]

        o_ref[0] = (x1 + ff).astype(o_ref.dtype)

    return kernel


def _vmem_capacity_bytes():
    try:
        cap = getattr(pltpu.get_tpu_info(), "vmem_capacity_bytes", None)
        if cap:
            return int(cap)
    except Exception:
        pass
    return 64 * 1024 * 1024          # conservative fallback (v7x physical VMEM)


def transformer_encoder_layer(x, mask, params, num_heads, *,
                              q_tile=None, compute_dtype=jnp.bfloat16):
    B, S, D = x.shape
    DFF = params["w1"].shape[1]
    d_k = D // num_heads
    assert num_heads * d_k == D

    # Query tile: bounds live state ((H, TQ, S) scores, FFN hidden) per grid step.
    # 128 is safe on every generation; pass q_tile=256 on v6e (2x256x256 MXU,
    # 128 MiB VMEM) for better M-dim utilisation.
    # TODO(synk): for very long S on v7x add a key-tile grid axis with
    # flash-style online softmax instead of materialising (H, TQ, S) scores.
    if q_tile is None:
        q_tile = S
        for cand in (128, 64, 32, 16, 8):
            if S % cand == 0:
                q_tile = cand
                break
    TQ = q_tile
    assert S % TQ == 0 and (TQ % 8 == 0 or TQ == S)
    n_q = S // TQ

    f32 = jnp.float32
    scale = 1.0 / math.sqrt(d_k)

    # Parameter prep (pure XLA, outside the kernel):
    #  * fold the 1/sqrt(d_k) score scale into Wq / bq
    #  * fuse K and V projections into one (D, 2D) weight
    #  * cast matmul weights + the K/V copy of x to the compute dtype
    #    (biases / LN params stay f32, added after f32 accumulation)
    #  * turn the boolean mask into an additive f32 bias (0 / -1e9)
    # TODO(synk): for v5e, pad D / DFF to multiples of 128 here if they are not.
    wq = (params["wq"] * scale).astype(compute_dtype)
    bq = (params["bq"] * scale).astype(f32)
    wkv = jnp.concatenate([params["wk"], params["wv"]], axis=1).astype(compute_dtype)
    bkv = jnp.concatenate([params["bk"], params["bv"]], axis=1).astype(f32)
    wo = params["wo"].astype(compute_dtype)
    w1 = params["w1"].astype(compute_dtype)
    w2 = params["w2"].astype(compute_dtype)
    x_kv = x.astype(compute_dtype)
    mask_bias = jnp.where(mask > 0, 0.0, -1e9).astype(f32)       # (B, 1, S)

    approx_recip = jnp.dtype(compute_dtype) != jnp.dtype(jnp.float32)
    kernel = _make_kernel(num_heads, d_k, compute_dtype, approx_recip)

    # Grid-invariant blocks (weights / biases / LN params): single-buffered so
    # the resident weight set is not doubled (critical on v7x's 64 MiB VMEM).
    def const_spec(shape):
        return pl.BlockSpec(shape, lambda b, qi: (0,) * len(shape),
                            pipeline_mode=pl.Buffered(1))

    in_specs = [
        pl.BlockSpec((1, TQ, D), lambda b, qi: (b, qi, 0)),   # x : query tile / residual (f32)
        pl.BlockSpec((1, S, D), lambda b, qi: (b, 0, 0)),     # x : full sequence for K/V (compute dtype)
        pl.BlockSpec((1, 1, S), lambda b, qi: (b, 0, 0)),     # additive mask bias
        const_spec((1, D)), const_spec((1, D)),               # ln1 w, b
        const_spec((D, D)), const_spec((1, D)),               # Wq (pre-scaled), bq
        const_spec((D, 2 * D)), const_spec((1, 2 * D)),       # fused Wkv, bkv
        const_spec((D, D)), const_spec((1, D)),               # Wo, bo
        const_spec((1, D)), const_spec((1, D)),               # ln2 w, b
        const_spec((D, DFF)), const_spec((1, DFF)),           # W1, b1
        const_spec((DFF, D)), const_spec((1, D)),             # W2, b2
    ]
    out_specs = pl.BlockSpec((1, TQ, D), lambda b, qi: (b, qi, 0))

    # VMEM budget: single-buffered weights + streamed x/out tiles + K/V head
    # scratch + live attention / FFN temporaries, with headroom, capped to HW.
    cb = jnp.dtype(compute_dtype).itemsize
    weight_bytes = (4 * D * D + 2 * D * DFF) * cb
    small_bytes = (10 * D + DFF) * 4
    stream_bytes = 2 * 2 * TQ * D * 4 + 2 * S * D * cb + 2 * S * 4
    scratch_bytes = 2 * S * D * cb
    live_bytes = 3 * num_heads * TQ * S * 4 + TQ * DFF * 4 + 6 * TQ * D * 4
    footprint = weight_bytes + small_bytes + stream_bytes + scratch_bytes + live_bytes
    vmem_cap = min(_vmem_capacity_bytes(), 128 * 1024 * 1024)
    vmem_limit = int(min(max(int(footprint * 1.3) + (2 << 20), 16 << 20),
                         int(vmem_cap * 0.875)))

    # Advisory cost estimate so XLA schedules neighbouring ops around the call.
    flops = (2 * B * S * D * (4 * D + 2 * DFF)       # Q/KV/O projections + FFN
             + 4 * B * S * S * D)                    # Q.K^T + P.V over all heads
    transcendentals = B * num_heads * S * (S + 1)    # exp + softmax reciprocal
    bytes_accessed = (2 * B * S * D * 4 + B * S * D * cb + B * S * 4
                      + weight_bytes + small_bytes)

    return pl.pallas_call(
        kernel,
        out_shape=jax.ShapeDtypeStruct((B, S, D), x.dtype),
        grid=(B, n_q),
        in_specs=in_specs,
        out_specs=out_specs,
        scratch_shapes=[
            pltpu.VMEM((num_heads, S, d_k), compute_dtype),   # K heads (persistent per batch)
            pltpu.VMEM((num_heads, S, d_k), compute_dtype),   # V heads
        ],
        compiler_params=pltpu.CompilerParams(
            # qi must be 'arbitrary': the K/V scratch persists across query tiles.
            # B stays 'parallel' (megacore / v7x dual-TC sharding).
            dimension_semantics=("parallel", "arbitrary"),
            vmem_limit_bytes=vmem_limit),
        cost_estimate=pl.CostEstimate(flops=int(flops),
                                      transcendentals=int(transcendentals),
                                      bytes_accessed=int(bytes_accessed)),
        # TODO(synk): if D*DFF weights still exceed the v7x budget single-buffered,
        # add a DFF grid axis (column tiles of W1 / row tiles of W2) and stream them.
    )(x, x_kv, mask_bias,
      params["ln1_w"], params["ln1_b"],
      wq, bq, wkv, bkv, wo, params["bo"],
      params["ln2_w"], params["ln2_b"],
      w1, params["b1"], w2, params["b2"])


# ----- pure-JAX reference (mirrors the PyTorch forward, f32) -----
def reference(x, mask, params, num_heads):
    eps = 1e-5
    B, S, D = x.shape
    d_k = D // num_heads

    def ln(v, w, b):
        mu = jnp.mean(v, axis=-1, keepdims=True)
        var = jnp.mean((v - mu) ** 2, axis=-1, keepdims=True)
        return (v - mu) / jnp.sqrt(var + eps) * w[0] + b[0]

    xn = ln(x, params["ln1_w"], params["ln1_b"])
    q = xn @ params["wq"] + params["bq"][0]
    k = xn @ params["wk"] + params["bk"][0]
    v = xn @ params["wv"] + params["bv"][0]
    q = q.reshape(B, S, num_heads, d_k).transpose(0, 2, 1, 3)
    k = k.reshape(B, S, num_heads, d_k).transpose(0, 2, 1, 3)
    v = v.reshape(B, S, num_heads, d_k).transpose(0, 2, 1, 3)
    s = jnp.einsum("bhqd,bhkd->bhqk", q, k) / math.sqrt(d_k)
    s = jnp.where(mask[:, None, :, :] > 0, s, -1e9)
    p = jax.nn.softmax(s, axis=-1)
    attn = jnp.einsum("bhqk,bhkd->bhqd", p, v).transpose(0, 2, 1, 3).reshape(B, S, D)
    attn = attn @ params["wo"] + params["bo"][0]
    x1 = x + attn
    xn2 = ln(x1, params["ln2_w"], params["ln2_b"])
    ff = jnp.maximum(xn2 @ params["w1"] + params["b1"][0], 0.0) @ params["w2"] + params["b2"][0]
    return x1 + ff


if __name__ == "__main__":
    B, S, D, H, DFF = 2, 8, 32, 4, 64

    key = jax.random.PRNGKey(0)
    keys = jax.random.split(key, 16)

    def w(k, shape, scale=0.1):
        return (scale * jax.random.normal(k, shape)).astype(jnp.float32)

    params = {
        "ln1_w": jnp.ones((1, D), jnp.float32),
        "ln1_b": jnp.zeros((1, D), jnp.float32),
        "ln2_w": jnp.ones((1, D), jnp.float32),
        "ln2_b": jnp.zeros((1, D), jnp.float32),
        "wq": w(keys[0], (D, D)), "bq": w(keys[1], (1, D)),
        "wk": w(keys[2], (D, D)), "bk": w(keys[3], (1, D)),
        "wv": w(keys[4], (D, D)), "bv": w(keys[5], (1, D)),
        "wo": w(keys[6], (D, D)), "bo": w(keys[7], (1, D)),
        "w1": w(keys[8], (D, DFF)), "b1": w(keys[9], (1, DFF)),
        "w2": w(keys[10], (DFF, D)), "b2": w(keys[11], (1, D)),
    }

    x = jax.random.normal(keys[12], (B, S, D), dtype=jnp.float32)
    # mask: (B, 1, S); batch 1 has the last 2 key positions masked out
    mask = jnp.ones((B, 1, S), dtype=jnp.float32)
    mask = mask.at[1, 0, S - 2:].set(0.0)

    ref = reference(x, mask, params, num_heads=H)

    # f32 compute path (exact softmax reciprocal): tight structural check.
    out_f32 = transformer_encoder_layer(x, mask, params, num_heads=H,
                                        compute_dtype=jnp.float32)
    out_f32 = jax.block_until_ready(out_f32)
    assert out_f32.shape == (B, S, D)
    assert jnp.allclose(out_f32, ref, atol=2e-3, rtol=2e-3), "f32 path mismatch vs reference"

    # bf16 matmul-input path (the performance configuration): sanity check.
    out_bf16 = transformer_encoder_layer(x, mask, params, num_heads=H,
                                         compute_dtype=jnp.bfloat16)
    out_bf16 = jax.block_until_ready(out_bf16)
    assert out_bf16.shape == (B, S, D)
    assert jnp.allclose(out_bf16, ref, atol=5e-2, rtol=5e-2), "bf16 path mismatch vs reference"

    print("KERNEL_OK")
</pallas_src>

<mosaic_0001>
module attributes {stable_mosaic.version = 11 : i64} {
  func.func @kernel(%arg0: i32, %arg1: i32, %arg2: memref<1x8x32xf32, #tpu.memory_space<vmem>>, %arg3: memref<1x8x32xf32, #tpu.memory_space<vmem>>, %arg4: memref<1x1x8xf32, #tpu.memory_space<vmem>>, %arg5: memref<1x32xf32, #tpu.memory_space<vmem>>, %arg6: memref<1x32xf32, #tpu.memory_space<vmem>>, %arg7: memref<32x32xf32, #tpu.memory_space<vmem>>, %arg8: memref<1x32xf32, #tpu.memory_space<vmem>>, %arg9: memref<32x64xf32, #tpu.memory_space<vmem>>, %arg10: memref<1x64xf32, #tpu.memory_space<vmem>>, %arg11: memref<32x32xf32, #tpu.memory_space<vmem>>, %arg12: memref<1x32xf32, #tpu.memory_space<vmem>>, %arg13: memref<1x32xf32, #tpu.memory_space<vmem>>, %arg14: memref<1x32xf32, #tpu.memory_space<vmem>>, %arg15: memref<32x64xf32, #tpu.memory_space<vmem>>, %arg16: memref<1x64xf32, #tpu.memory_space<vmem>>, %arg17: memref<64x32xf32, #tpu.memory_space<vmem>>, %arg18: memref<1x32xf32, #tpu.memory_space<vmem>>, %arg19: memref<1x8x32xf32, #tpu.memory_space<vmem>>, %arg20: memref<4x8x8xf32, #tpu.memory_space<vmem>>, %arg21: memref<4x8x8xf32, #tpu.memory_space<vmem>>) attributes {dimension_semantics = [#tpu.dimension_semantics<parallel>, #tpu.dimension_semantics<arbitrary>], iteration_bounds = array<i64: 2, 1>, scalar_prefetch = 0 : i64, scratch_operands = 2 : i64, tpu.core_type = #tpu.core_type<tc>, window_params = [{transform_indices = @transform_0, window_bounds = array<i64: 1, 8, 32>}, {transform_indices = @transform_1, window_bounds = array<i64: 1, 8, 32>}, {transform_indices = @transform_2, window_bounds = array<i64: 1, 1, 8>}, {pipeline_mode = #tpu.pipeline_mode<synchronous>, transform_indices = @transform_3, window_bounds = array<i64: 1, 32>}, {pipeline_mode = #tpu.pipeline_mode<synchronous>, transform_indices = @transform_4, window_bounds = array<i64: 1, 32>}, {pipeline_mode = #tpu.pipeline_mode<synchronous>, transform_indices = @transform_5, window_bounds = array<i64: 32, 32>}, {pipeline_mode = #tpu.pipeline_mode<synchronous>, transform_indices = @transform_6, window_bounds = array<i64: 1, 32>}, {pipeline_mode = #tpu.pipeline_mode<synchronous>, transform_indices = @transform_7, window_bounds = array<i64: 32, 64>}, {pipeline_mode = #tpu.pipeline_mode<synchronous>, transform_indices = @transform_8, window_bounds = array<i64: 1, 64>}, {pipeline_mode = #tpu.pipeline_mode<synchronous>, transform_indices = @transform_9, window_bounds = array<i64: 32, 32>}, {pipeline_mode = #tpu.pipeline_mode<synchronous>, transform_indices = @transform_10, window_bounds = array<i64: 1, 32>}, {pipeline_mode = #tpu.pipeline_mode<synchronous>, transform_indices = @transform_11, window_bounds = array<i64: 1, 32>}, {pipeline_mode = #tpu.pipeline_mode<synchronous>, transform_indices = @transform_12, window_bounds = array<i64: 1, 32>}, {pipeline_mode = #tpu.pipeline_mode<synchronous>, transform_indices = @transform_13, window_bounds = array<i64: 32, 64>}, {pipeline_mode = #tpu.pipeline_mode<synchronous>, transform_indices = @transform_14, window_bounds = array<i64: 1, 64>}, {pipeline_mode = #tpu.pipeline_mode<synchronous>, transform_indices = @transform_15, window_bounds = array<i64: 64, 32>}, {pipeline_mode = #tpu.pipeline_mode<synchronous>, transform_indices = @transform_16, window_bounds = array<i64: 1, 32>}, {transform_indices = @transform_17, window_bounds = array<i64: 1, 8, 32>}]} {
    %c0 = arith.constant 0 : index
    %c0_0 = arith.constant 0 : index
    %c0_1 = arith.constant 0 : index
    %0 = vector.load %arg2[%c0, %c0_0, %c0_1] : memref<1x8x32xf32, #tpu.memory_space<vmem>>, vector<1x8x32xf32>
    %1 = vector.shape_cast %0 : vector<1x8x32xf32> to vector<8x32xf32>
    %c0_2 = arith.constant 0 : index
    %c0_3 = arith.constant 0 : index
    %2 = vector.load %arg5[%c0_2, %c0_3] : memref<1x32xf32, #tpu.memory_space<vmem>>, vector<1x32xf32>
    %c0_4 = arith.constant 0 : index
    %c0_5 = arith.constant 0 : index
    %3 = vector.load %arg6[%c0_4, %c0_5] : memref<1x32xf32, #tpu.memory_space<vmem>>, vector<1x32xf32>
    %c0_i32 = arith.constant 0 : i32
    %4 = arith.cmpi eq, %arg1, %c0_i32 : i32
    %5 = arith.extui %4 : i1 to i32
    %c0_i32_6 = arith.constant 0 : i32
    %6 = arith.cmpi ne, %5, %c0_i32_6 : i32
    scf.if %6 {
      %c0_57 = arith.constant 0 : index
      %c0_58 = arith.constant 0 : index
      %c0_59 = arith.constant 0 : index
      %103 = vector.load %arg3[%c0_57, %c0_58, %c0_59] : memref<1x8x32xf32, #tpu.memory_space<vmem>>, vector<1x8x32xf32>
      %104 = vector.shape_cast %103 : vector<1x8x32xf32> to vector<8x32xf32>
      %cst_60 = arith.constant dense<0.000000e+00> : vector<8xf32>
      %105 = vector.multi_reduction <add>, %104, %cst_60 [1] : vector<8x32xf32> to vector<8xf32>
      %106 = vector.shape_cast %105 : vector<8xf32> to vector<8x1xf32>
      %cst_61 = arith.constant 3.200000e+01 : f32
      %107 = vector.broadcast %cst_61 : f32 to vector<8x1xf32>
      %108 = arith.divf %106, %107 : vector<8x1xf32>
      %109 = vector.broadcast %108 : vector<8x1xf32> to vector<8x32xf32>
      %110 = arith.subf %104, %109 : vector<8x32xf32>
      %111 = arith.mulf %110, %110 : vector<8x32xf32>
      %cst_62 = arith.constant dense<0.000000e+00> : vector<8xf32>
      %112 = vector.multi_reduction <add>, %111, %cst_62 [1] : vector<8x32xf32> to vector<8xf32>
      %113 = vector.shape_cast %112 : vector<8xf32> to vector<8x1xf32>
      %cst_63 = arith.constant 3.200000e+01 : f32
      %114 = vector.broadcast %cst_63 : f32 to vector<8x1xf32>
      %115 = arith.divf %113, %114 : vector<8x1xf32>
      %116 = vector.broadcast %108 : vector<8x1xf32> to vector<8x32xf32>
      %117 = arith.subf %104, %116 : vector<8x32xf32>
      %cst_64 = arith.constant 9.99999974E-6 : f32
      %118 = vector.broadcast %cst_64 : f32 to vector<8x1xf32>
      %119 = arith.addf %115, %118 : vector<8x1xf32>
      %120 = math.rsqrt %119 : vector<8x1xf32>
      %121 = vector.broadcast %120 : vector<8x1xf32> to vector<8x32xf32>
      %122 = arith.mulf %117, %121 : vector<8x32xf32>
      %123 = vector.broadcast %2 : vector<1x32xf32> to vector<8x32xf32>
      %124 = arith.mulf %122, %123 : vector<8x32xf32>
      %125 = vector.broadcast %3 : vector<1x32xf32> to vector<8x32xf32>
      %126 = arith.addf %124, %125 : vector<8x32xf32>
      %c0_65 = arith.constant 0 : index
      %c0_66 = arith.constant 0 : index
      %127 = vector.load %arg9[%c0_65, %c0_66] : memref<32x64xf32, #tpu.memory_space<vmem>>, vector<32x64xf32>
      %cst_67 = arith.constant dense<0.000000e+00> : vector<8x64xf32>
      %128 = tpu.matmul %126, %127, %cst_67 {dimension_numbers = #tpu.dot_dimension_numbers<[1], [0], [0], [1], [0, 0, 1, 1], [], []>} : vector<8x32xf32>, vector<32x64xf32>, vector<8x64xf32> -> vector<8x64xf32>
      %c0_68 = arith.constant 0 : index
      %c0_69 = arith.constant 0 : index
      %129 = vector.load %arg10[%c0_68, %c0_69] : memref<1x64xf32, #tpu.memory_space<vmem>>, vector<1x64xf32>
      %130 = vector.broadcast %129 : vector<1x64xf32> to vector<8x64xf32>
      %131 = arith.addf %128, %130 : vector<8x64xf32>
      %132 = vector.extract_strided_slice %131 {offsets = [0, 0], sizes = [8, 32], strides = [1, 1]} : vector<8x64xf32> to vector<8x32xf32>
      %133 = vector.shape_cast %132 : vector<8x32xf32> to vector<8x4x8xf32>
      %134 = tpu.transpose %133, [1, 0, 2] : vector<8x4x8xf32> -> vector<4x8x8xf32>
      %c0_70 = arith.constant 0 : index
      %c0_71 = arith.constant 0 : index
      %c0_72 = arith.constant 0 : index
      %135 = vector.load %arg20[%c0_70, %c0_71, %c0_72] : memref<4x8x8xf32, #tpu.memory_space<vmem>>, vector<4x8x8xf32>
      tpu.vector_store %arg20[%c0_70, %c0_71, %c0_72], %134 {strides = array<i32>} : memref<4x8x8xf32, #tpu.memory_space<vmem>>, vector<4x8x8xf32>,
      %136 = vector.extract_strided_slice %131 {offsets = [0, 32], sizes = [8, 32], strides = [1, 1]} : vector<8x64xf32> to vector<8x32xf32>
      %137 = vector.shape_cast %136 : vector<8x32xf32> to vector<8x4x8xf32>
      %138 = tpu.transpose %137, [1, 0, 2] : vector<8x4x8xf32> -> vector<4x8x8xf32>
      %c0_73 = arith.constant 0 : index
      %c0_74 = arith.constant 0 : index
      %c0_75 = arith.constant 0 : index
      %139 = vector.load %arg21[%c0_73, %c0_74, %c0_75] : memref<4x8x8xf32, #tpu.memory_space<vmem>>, vector<4x8x8xf32>
      tpu.vector_store %arg21[%c0_73, %c0_74, %c0_75], %138 {strides = array<i32>} : memref<4x8x8xf32, #tpu.memory_space<vmem>>, vector<4x8x8xf32>,
    } else {
    }
    %cst = arith.constant dense<0.000000e+00> : vector<8xf32>
    %7 = vector.multi_reduction <add>, %1, %cst [1] : vector<8x32xf32> to vector<8xf32>
    %8 = vector.shape_cast %7 : vector<8xf32> to vector<8x1xf32>
    %cst_7 = arith.constant 3.200000e+01 : f32
    %9 = vector.broadcast %cst_7 : f32 to vector<8x1xf32>
    %10 = arith.divf %8, %9 : vector<8x1xf32>
    %11 = vector.broadcast %10 : vector<8x1xf32> to vector<8x32xf32>
    %12 = arith.subf %1, %11 : vector<8x32xf32>
    %13 = arith.mulf %12, %12 : vector<8x32xf32>
    %cst_8 = arith.constant dense<0.000000e+00> : vector<8xf32>
    %14 = vector.multi_reduction <add>, %13, %cst_8 [1] : vector<8x32xf32> to vector<8xf32>
    %15 = vector.shape_cast %14 : vector<8xf32> to vector<8x1xf32>
    %cst_9 = arith.constant 3.200000e+01 : f32
    %16 = vector.broadcast %cst_9 : f32 to vector<8x1xf32>
    %17 = arith.divf %15, %16 : vector<8x1xf32>
    %18 = vector.broadcast %10 : vector<8x1xf32> to vector<8x32xf32>
    %19 = arith.subf %1, %18 : vector<8x32xf32>
    %cst_10 = arith.constant 9.99999974E-6 : f32
    %20 = vector.broadcast %cst_10 : f32 to vector<8x1xf32>
    %21 = arith.addf %17, %20 : vector<8x1xf32>
    %22 = math.rsqrt %21 : vector<8x1xf32>
    %23 = vector.broadcast %22 : vector<8x1xf32> to vector<8x32xf32>
    %24 = arith.mulf %19, %23 : vector<8x32xf32>
    %25 = vector.broadcast %2 : vector<1x32xf32> to vector<8x32xf32>
    %26 = arith.mulf %24, %25 : vector<8x32xf32>
    %27 = vector.broadcast %3 : vector<1x32xf32> to vector<8x32xf32>
    %28 = arith.addf %26, %27 : vector<8x32xf32>
    %c0_11 = arith.constant 0 : index
    %c0_12 = arith.constant 0 : index
    %29 = vector.load %arg7[%c0_11, %c0_12] : memref<32x32xf32, #tpu.memory_space<vmem>>, vector<32x32xf32>
    %cst_13 = arith.constant dense<0.000000e+00> : vector<8x32xf32>
    %30 = tpu.matmul %28, %29, %cst_13 {dimension_numbers = #tpu.dot_dimension_numbers<[1], [0], [0], [1], [0, 0, 1, 1], [], []>} : vector<8x32xf32>, vector<32x32xf32>, vector<8x32xf32> -> vector<8x32xf32>
    %c0_14 = arith.constant 0 : index
    %c0_15 = arith.constant 0 : index
    %31 = vector.load %arg8[%c0_14, %c0_15] : memref<1x32xf32, #tpu.memory_space<vmem>>, vector<1x32xf32>
    %32 = vector.broadcast %31 : vector<1x32xf32> to vector<8x32xf32>
    %33 = arith.addf %30, %32 : vector<8x32xf32>
    %34 = vector.shape_cast %33 : vector<8x32xf32> to vector<8x4x8xf32>
    %35 = tpu.transpose %34, [1, 0, 2] : vector<8x4x8xf32> -> vector<4x8x8xf32>
    %c0_16 = arith.constant 0 : index
    %c0_17 = arith.constant 0 : index
    %c0_18 = arith.constant 0 : index
    %36 = vector.load %arg20[%c0_16, %c0_17, %c0_18] : memref<4x8x8xf32, #tpu.memory_space<vmem>>, vector<4x8x8xf32>
    "tpu.trace_start"() <{level = 10 : i32, message = "hqd,hkd->hqk"}> : () -> ()
    %cst_19 = arith.constant dense<0.000000e+00> : vector<4x8x8xf32>
    %37 = tpu.matmul %35, %36, %cst_19 {dimension_numbers = #tpu.dot_dimension_numbers<[2], [2], [1], [1], [0, 0, 0, 1, 1, 1], [0], [0]>} : vector<4x8x8xf32>, vector<4x8x8xf32>, vector<4x8x8xf32> -> vector<4x8x8xf32>
    "tpu.trace_stop"() : () -> ()
    %c0_20 = arith.constant 0 : index
    %c0_21 = arith.constant 0 : index
    %c0_22 = arith.constant 0 : index
    %38 = vector.load %arg4[%c0_20, %c0_21, %c0_22] : memref<1x1x8xf32, #tpu.memory_space<vmem>>, vector<1x1x8xf32>
    %39 = vector.shape_cast %38 : vector<1x1x8xf32> to vector<1x8xf32>
    %40 = vector.shape_cast %39 : vector<1x8xf32> to vector<1x1x8xf32>
    %41 = vector.broadcast %40 : vector<1x1x8xf32> to vector<4x8x8xf32>
    %42 = arith.addf %37, %41 : vector<4x8x8xf32>
    %cst_23 = arith.constant dense<0xFF800000> : vector<4x8xf32>
    %43 = vector.multi_reduction <maximumf>, %42, %cst_23 [2] : vector<4x8x8xf32> to vector<4x8xf32>
    %44 = vector.shape_cast %43 : vector<4x8xf32> to vector<4x8x1xf32>
    %45 = vector.broadcast %44 : vector<4x8x1xf32> to vector<4x8x8xf32>
    %46 = arith.subf %42, %45 : vector<4x8x8xf32>
    %47 = math.exp %46 : vector<4x8x8xf32>
    %cst_24 = arith.constant dense<0.000000e+00> : vector<4x8xf32>
    %48 = vector.multi_reduction <add>, %47, %cst_24 [2] : vector<4x8x8xf32> to vector<4x8xf32>
    %49 = vector.shape_cast %48 : vector<4x8xf32> to vector<4x8x1xf32>
    %50 = tpu.reciprocal %49 : vector<4x8x1xf32> -> vector<4x8x1xf32>
    %51 = vector.broadcast %50 : vector<4x8x1xf32> to vector<4x8x8xf32>
    %52 = arith.mulf %47, %51 : vector<4x8x8xf32>
    %c0_25 = arith.constant 0 : index
    %c0_26 = arith.constant 0 : index
    %c0_27 = arith.constant 0 : index
    %53 = vector.load %arg21[%c0_25, %c0_26, %c0_27] : memref<4x8x8xf32, #tpu.memory_space<vmem>>, vector<4x8x8xf32>
    "tpu.trace_start"() <{level = 10 : i32, message = "hqk,hkd->hqd"}> : () -> ()
    %cst_28 = arith.constant dense<0.000000e+00> : vector<4x8x8xf32>
    %54 = tpu.matmul %52, %53, %cst_28 {dimension_numbers = #tpu.dot_dimension_numbers<[2], [1], [1], [2], [0, 0, 0, 1, 1, 2], [0], [0]>} : vector<4x8x8xf32>, vector<4x8x8xf32>, vector<4x8x8xf32> -> vector<4x8x8xf32>
    "tpu.trace_stop"() : () -> ()
    %55 = tpu.transpose %54, [1, 0, 2] : vector<4x8x8xf32> -> vector<8x4x8xf32>
    %56 = vector.shape_cast %55 : vector<8x4x8xf32> to vector<8x32xf32>
    %c0_29 = arith.constant 0 : index
    %c0_30 = arith.constant 0 : index
    %57 = vector.load %arg11[%c0_29, %c0_30] : memref<32x32xf32, #tpu.memory_space<vmem>>, vector<32x32xf32>
    %cst_31 = arith.constant dense<0.000000e+00> : vector<8x32xf32>
    %58 = tpu.matmul %56, %57, %cst_31 {dimension_numbers = #tpu.dot_dimension_numbers<[1], [0], [0], [1], [0, 0, 1, 1], [], []>} : vector<8x32xf32>, vector<32x32xf32>, vector<8x32xf32> -> vector<8x32xf32>
    %c0_32 = arith.constant 0 : index
    %c0_33 = arith.constant 0 : index
    %59 = vector.load %arg12[%c0_32, %c0_33] : memref<1x32xf32, #tpu.memory_space<vmem>>, vector<1x32xf32>
    %60 = vector.broadcast %59 : vector<1x32xf32> to vector<8x32xf32>
    %61 = arith.addf %58, %60 : vector<8x32xf32>
    %62 = arith.addf %1, %61 : vector<8x32xf32>
    %c0_34 = arith.constant 0 : index
    %c0_35 = arith.constant 0 : index
    %63 = vector.load %arg13[%c0_34, %c0_35] : memref<1x32xf32, #tpu.memory_space<vmem>>, vector<1x32xf32>
    %c0_36 = arith.constant 0 : index
    %c0_37 = arith.constant 0 : index
    %64 = vector.load %arg14[%c0_36, %c0_37] : memref<1x32xf32, #tpu.memory_space<vmem>>, vector<1x32xf32>
    %cst_38 = arith.constant dense<0.000000e+00> : vector<8xf32>
    %65 = vector.multi_reduction <add>, %62, %cst_38 [1] : vector<8x32xf32> to vector<8xf32>
    %66 = vector.shape_cast %65 : vector<8xf32> to vector<8x1xf32>
    %cst_39 = arith.constant 3.200000e+01 : f32
    %67 = vector.broadcast %cst_39 : f32 to vector<8x1xf32>
    %68 = arith.divf %66, %67 : vector<8x1xf32>
    %69 = vector.broadcast %68 : vector<8x1xf32> to vector<8x32xf32>
    %70 = arith.subf %62, %69 : vector<8x32xf32>
    %71 = arith.mulf %70, %70 : vector<8x32xf32>
    %cst_40 = arith.constant dense<0.000000e+00> : vector<8xf32>
    %72 = vector.multi_reduction <add>, %71, %cst_40 [1] : vector<8x32xf32> to vector<8xf32>
    %73 = vector.shape_cast %72 : vector<8xf32> to vector<8x1xf32>
    %cst_41 = arith.constant 3.200000e+01 : f32
    %74 = vector.broadcast %cst_41 : f32 to vector<8x1xf32>
    %75 = arith.divf %73, %74 : vector<8x1xf32>
    %76 = vector.broadcast %68 : vector<8x1xf32> to vector<8x32xf32>
    %77 = arith.subf %62, %76 : vector<8x32xf32>
    %cst_42 = arith.constant 9.99999974E-6 : f32
    %78 = vector.broadcast %cst_42 : f32 to vector<8x1xf32>
    %79 = arith.addf %75, %78 : vector<8x1xf32>
    %80 = math.rsqrt %79 : vector<8x1xf32>
    %81 = vector.broadcast %80 : vector<8x1xf32> to vector<8x32xf32>
    %82 = arith.mulf %77, %81 : vector<8x32xf32>
    %83 = vector.broadcast %63 : vector<1x32xf32> to vector<8x32xf32>
    %84 = arith.mulf %82, %83 : vector<8x32xf32>
    %85 = vector.broadcast %64 : vector<1x32xf32> to vector<8x32xf32>
    %86 = arith.addf %84, %85 : vector<8x32xf32>
    %c0_43 = arith.constant 0 : index
    %c0_44 = arith.constant 0 : index
    %87 = vector.load %arg15[%c0_43, %c0_44] : memref<32x64xf32, #tpu.memory_space<vmem>>, vector<32x64xf32>
    %cst_45 = arith.constant dense<0.000000e+00> : vector<8x64xf32>
    %88 = tpu.matmul %86, %87, %cst_45 {dimension_numbers = #tpu.dot_dimension_numbers<[1], [0], [0], [1], [0, 0, 1, 1], [], []>} : vector<8x32xf32>, vector<32x64xf32>, vector<8x64xf32> -> vector<8x64xf32>
    %c0_46 = arith.constant 0 : index
    %c0_47 = arith.constant 0 : index
    %89 = vector.load %arg16[%c0_46, %c0_47] : memref<1x64xf32, #tpu.memory_space<vmem>>, vector<1x64xf32>
    %90 = vector.broadcast %89 : vector<1x64xf32> to vector<8x64xf32>
    %91 = arith.addf %88, %90 : vector<8x64xf32>
    %cst_48 = arith.constant 0.000000e+00 : f32
    %92 = vector.broadcast %cst_48 : f32 to vector<8x64xf32>
    %93 = arith.maximumf %91, %92 : vector<8x64xf32>
    %c0_49 = arith.constant 0 : index
    %c0_50 = arith.constant 0 : index
    %94 = vector.load %arg17[%c0_49, %c0_50] : memref<64x32xf32, #tpu.memory_space<vmem>>, vector<64x32xf32>
    %cst_51 = arith.constant dense<0.000000e+00> : vector<8x32xf32>
    %95 = tpu.matmul %93, %94, %cst_51 {dimension_numbers = #tpu.dot_dimension_numbers<[1], [0], [0], [1], [0, 0, 1, 1], [], []>} : vector<8x64xf32>, vector<64x32xf32>, vector<8x32xf32> -> vector<8x32xf32>
    %c0_52 = arith.constant 0 : index
    %c0_53 = arith.constant 0 : index
    %96 = vector.load %arg18[%c0_52, %c0_53] : memref<1x32xf32, #tpu.memory_space<vmem>>, vector<1x32xf32>
    %97 = vector.broadcast %96 : vector<1x32xf32> to vector<8x32xf32>
    %98 = arith.addf %95, %97 : vector<8x32xf32>
    %99 = arith.addf %62, %98 : vector<8x32xf32>
    %c0_54 = arith.constant 0 : index
    %c0_55 = arith.constant 0 : index
    %c0_56 = arith.constant 0 : index
    %100 = vector.load %arg19[%c0_54, %c0_55, %c0_56] : memref<1x8x32xf32, #tpu.memory_space<vmem>>, vector<1x8x32xf32>
    %101 = vector.shape_cast %100 : vector<1x8x32xf32> to vector<8x32xf32>
    %102 = vector.shape_cast %99 : vector<8x32xf32> to vector<1x8x32xf32>
    tpu.vector_store %arg19[%c0_54, %c0_55, %c0_56], %102 {strides = array<i32>} : memref<1x8x32xf32, #tpu.memory_space<vmem>>, vector<1x8x32xf32>,
    return
  }
  func.func @transform_0(%arg0: i32, %arg1: i32) -> (i32, i32, i32) {
    %c0_i32 = arith.constant 0 : i32
    %c0_i32_0 = arith.constant 0 : i32
    return %arg0, %arg1, %c0_i32 : i32, i32, i32
  }
  func.func @transform_1(%arg0: i32, %arg1: i32) -> (i32, i32, i32) {
    %c0_i32 = arith.constant 0 : i32
    %c0_i32_0 = arith.constant 0 : i32
    %c0_i32_1 = arith.constant 0 : i32
    return %arg0, %c0_i32, %c0_i32_0 : i32, i32, i32
  }
  func.func @transform_2(%arg0: i32, %arg1: i32) -> (i32, i32, i32) {
    %c0_i32 = arith.constant 0 : i32
    %c0_i32_0 = arith.constant 0 : i32
    %c0_i32_1 = arith.constant 0 : i32
    return %arg0, %c0_i32, %c0_i32_0 : i32, i32, i32
  }
  func.func @transform_3(%arg0: i32, %arg1: i32) -> (i32, i32) {
    %c0_i32 = arith.constant 0 : i32
    %c0_i32_0 = arith.constant 0 : i32
    %c0_i32_1 = arith.constant 0 : i32
    return %c0_i32, %c0_i32_0 : i32, i32
  }
  func.func @transform_4(%arg0: i32, %arg1: i32) -> (i32, i32) {
    %c0_i32 = arith.constant 0 : i32
    %c0_i32_0 = arith.constant 0 : i32
    %c0_i32_1 = arith.constant 0 : i32
    return %c0_i32, %c0_i32_0 : i32, i32
  }
  func.func @transform_5(%arg0: i32, %arg1: i32) -> (i32, i32) {
    %c0_i32 = arith.constant 0 : i32
    %c0_i32_0 = arith.constant 0 : i32
    %c0_i32_1 = arith.constant 0 : i32
    return %c0_i32, %c0_i32_0 : i32, i32
  }
  func.func @transform_6(%arg0: i32, %arg1: i32) -> (i32, i32) {
    %c0_i32 = arith.constant 0 : i32
    %c0_i32_0 = arith.constant 0 : i32
    %c0_i32_1 = arith.constant 0 : i32
    return %c0_i32, %c0_i32_0 : i32, i32
  }
  func.func @transform_7(%arg0: i32, %arg1: i32) -> (i32, i32) {
    %c0_i32 = arith.constant 0 : i32
    %c0_i32_0 = arith.constant 0 : i32
    %c0_i32_1 = arith.constant 0 : i32
    return %c0_i32, %c0_i32_0 : i32, i32
  }
  func.func @transform_8(%arg0: i32, %arg1: i32) -> (i32, i32) {
    %c0_i32 = arith.constant 0 : i32
    %c0_i32_0 = arith.constant 0 : i32
    %c0_i32_1 = arith.constant 0 : i32
    return %c0_i32, %c0_i32_0 : i32, i32
  }
  func.func @transform_9(%arg0: i32, %arg1: i32) -> (i32, i32) {
    %c0_i32 = arith.constant 0 : i32
    %c0_i32_0 = arith.constant 0 : i32
    %c0_i32_1 = arith.constant 0 : i32
    return %c0_i32, %c0_i32_0 : i32, i32
  }
  func.func @transform_10(%arg0: i32, %arg1: i32) -> (i32, i32) {
    %c0_i32 = arith.constant 0 : i32
    %c0_i32_0 = arith.constant 0 : i32
    %c0_i32_1 = arith.constant 0 : i32
    return %c0_i32, %c0_i32_0 : i32, i32
  }
  func.func @transform_11(%arg0: i32, %arg1: i32) -> (i32, i32) {
    %c0_i32 = arith.constant 0 : i32
    %c0_i32_0 = arith.constant 0 : i32
    %c0_i32_1 = arith.constant 0 : i32
    return %c0_i32, %c0_i32_0 : i32, i32
  }
  func.func @transform_12(%arg0: i32, %arg1: i32) -> (i32, i32) {
    %c0_i32 = arith.constant 0 : i32
    %c0_i32_0 = arith.constant 0 : i32
    %c0_i32_1 = arith.constant 0 : i32
    return %c0_i32, %c0_i32_0 : i32, i32
  }
  func.func @transform_13(%arg0: i32, %arg1: i32) -> (i32, i32) {
    %c0_i32 = arith.constant 0 : i32
    %c0_i32_0 = arith.constant 0 : i32
    %c0_i32_1 = arith.constant 0 : i32
    return %c0_i32, %c0_i32_0 : i32, i32
  }
  func.func @transform_14(%arg0: i32, %arg1: i32) -> (i32, i32) {
    %c0_i32 = arith.constant 0 : i32
    %c0_i32_0 = arith.constant 0 : i32
    %c0_i32_1 = arith.constant 0 : i32
    return %c0_i32, %c0_i32_0 : i32, i32
  }
  func.func @transform_15(%arg0: i32, %arg1: i32) -> (i32, i32) {
    %c0_i32 = arith.constant 0 : i32
    %c0_i32_0 = arith.constant 0 : i32
    %c0_i32_1 = arith.constant 0 : i32
    return %c0_i32, %c0_i32_0 : i32, i32
  }
  func.func @transform_16(%arg0: i32, %arg1: i32) -> (i32, i32) {
    %c0_i32 = arith.constant 0 : i32
    %c0_i32_0 = arith.constant 0 : i32
    %c0_i32_1 = arith.constant 0 : i32
    return %c0_i32, %c0_i32_0 : i32, i32
  }
  func.func @transform_17(%arg0: i32, %arg1: i32) -> (i32, i32, i32) {
    %c0_i32 = arith.constant 0 : i32
    %c0_i32_0 = arith.constant 0 : i32
    return %arg0, %arg1, %c0_i32 : i32, i32, i32
  }
}

</mosaic_0001>

<bundles_post_ra>
// kernel: tpu_custom_call.1
= control target key start
LH: loop header
LB: loop body
LE: loop exit
PB: predicated region body
PF: predicated region fallthrough
CT: control target
= control target key end

     0   :  { %s2918_s0 = inlined_call_operand.hbm [shape: f32[2,8,32], index: 0, kind: input, shape index: {}]   ;;  %s2919_s1 = inlined_call_operand.hbm [shape: f32[2,8,32], index: 1, kind: input, shape index: {}]   ;;  %s2920_s2 = inlined_call_operand.hbm [shape: f32[2,1,8], index: 2, kind: input, shape index: {}]   ;;  %s2921_s3 = inlined_call_operand.vmem [shape: f32[1,32], index: 3, kind: input, shape index: {}]   ;;  %s2922_s4 = inlined_call_operand.vmem [shape: f32[1,32], index: 4, kind: input, shape index: {}]   ;;  %s2923_s5 = inlined_call_operand.vmem [shape: f32[32,32], index: 5, kind: input, shape index: {}]   ;;  %s2924_s6 = inlined_call_operand.vmem [shape: f32[1,32], index: 6, kind: input, shape index: {}]   ;;  %s2925_s7 = inlined_call_operand.vmem [shape: f32[32,64], index: 7, kind: input, shape index: {}]   ;;  %s2926_s8 = inlined_call_operand.vmem [shape: f32[1,64], index: 8, kind: input, shape index: {}]   ;;  %s2927_s9 = inlined_call_operand.vmem [shape: f32[32,32], index: 9, kind: input, shape index: {}]   ;;  %s2928_s10 = inlined_call_operand.vmem [shape: f32[1,32], index: 10, kind: input, shape index: {}]   ;;  %s2929_s11 = inlined_call_operand.vmem [shape: f32[1,32], index: 11, kind: input, shape index: {}]   ;;  %s2930_s12 = inlined_call_operand.vmem [shape: f32[1,32], index: 12, kind: input, shape index: {}]   ;;  %s2931_s13 = inlined_call_operand.hbm [shape: f32[32,64], index: 13, kind: input, shape index: {}]   ;;  %s2932_s14 = inlined_call_operand.vmem [shape: f32[1,64], index: 14, kind: input, shape index: {}]   ;;  %s2933_s15 = inlined_call_operand.vmem [shape: f32[64,32], index: 15, kind: input, shape index: {}]   ;;  %s2934_s16 = inlined_call_operand.vmem [shape: f32[1,32], index: 16, kind: input, shape index: {}]   ;;  %s2935_s17 = inlined_call_operand.hbm [shape: f32[2,8,32], index: 17, kind: output, shape index: {}]  }
   0x1   :  { %2948 = sst [smem:[#allocation25_spill]] %s2918_s0 }
   0x2   :  { %2949 = sst [smem:[#allocation26_spill]] %s2919_s1 }
   0x3   :  { %2950 = sst [smem:[#allocation27_spill]] %s2924_s6 }
   0x4   :  { %2951 = sst [smem:[#allocation28_spill]] %s2927_s9 }
   0x5   :  { %2952 = sst [smem:[#allocation29_spill]] %s2928_s10 }
   0x6   :  { %2953 = sst [smem:[#allocation30_spill]] %s2929_s11 }
   0x7   :  { %2954 = sst [smem:[#allocation31_spill]] %s2930_s12 }
   0x8   :  { %2955 = sst [smem:[#allocation32_spill]] %s2931_s13 }
   0x9   :  { %2956 = sst [smem:[#allocation33_spill]] %s2932_s14 }
   0xa   :  { %2957 = sst [smem:[#allocation34_spill]] %s2933_s15 }
   0xb   :  { %2958 = sst [smem:[#allocation35_spill]] %s2934_s16 }
   0xc   :  { %2959 = sst [smem:[#allocation36_spill]] %s2935_s17 }
   0xd   :  { %22 = vsyncpa [#allocation5], 0 }
   0xe   :  { %24 = vsyncpa [#allocation5 + $0x1], 0 }
   0xf   :  { %25 = vsyncpa [#allocation8], 0 }
  0x10   :  { %27 = vsyncpa [#allocation8 + $0x1], 0 }
  0x11   :  { %28 = vsyncpa [#allocation11], 0 }
  0x12   :  { %29 = vsyncpa [#allocation6], 0 }
  0x13   :  { %31 = vsyncpa [#allocation6 + $0x1], 0  ;;  %s2382_s24 = smov 0   ;;  %s2384_s25 = smov 0  }
  0x14   :  { %s2386_s26 = smov 0   ;;  %s2388_s27 = smov 0  }
  0x15   :  { %s2390_s28 = smov 0   ;;  %s2392_s29 = smov 0  }
  0x16 LB: > { %2960 = sst [smem:[#allocation17_spill]] %s2257_s24  ;;  %s2413_s0 = sadd.s32 4294967295, %s2277_s29   ;;  %s2277_s29 = sphi %s2392_s29, %s37_s29   ;;  %s2273_s28 = sphi %s2390_s28, %s2998_s28   ;;  %s2269_s27 = sphi %s2388_s27, %s2997_s27   ;;  %s2265_s26 = sphi %s2386_s26, %s2993_s26   ;;  %s2261_s25 = sphi %s2384_s25, %s2996_s25   ;;  %s2257_s24 = sphi %s2382_s24, %s2995_s24  }
  0x17   : > { %2961 = sst [smem:[#allocation18_spill]] %s2265_s26  ;;  %s1903_s30 = sadd.s32 4294967294, %s2277_s29  }
  0x18   : > { %2962 = sst [smem:[#allocation19_spill]] %s2269_s27  ;;  %s49_s18 = sadd.s32 1, %s2273_s28 }
  0x19   : > { %2963 = sst [smem:[#allocation20_spill]] %s2277_s29  ;;  %s58_s19 = sadd.s32 1, %s2265_s26 }
  0x1a   : > { %p51_p0 = scmp.ge.s32.totalorder %s49_s18, 2  ;;  %p65_p1 = scmp.ne.s32.totalorder %s2265_s26, %s2261_s25 }
  0x1b   : > { %p66_p2 = scmp.eq.s32.totalorder %s2277_s29, 0  ;;  %p71_p3 = scmp.ne.s32.totalorder %s2261_s25, %s2257_s24 }
  0x1c   : > { %s3000_s18 = smov (%p51_p0, %s49_s18), 0  ;;  %p443_p5 = scmp.eq.s32.totalorder %s2413_s0, 1 }
  0x1d   : > { %2964 = sst [smem:[#allocation21_spill]] %s3000_s18  ;;  %p2425_p4 = por %p66_p2, %p65_p1 }
  0x1e   : > { %s53_s20 = ssub.s32 %s2273_s28, %s3000_s18  ;;  %p449_p6 = scmp.eq.s32.totalorder %s1903_s30, 1 }
  0x1f   : > { %p56_p7 = scmp.eq.s32.totalorder %s53_s20, 0  ;;  %p2432_p8 = por %p443_p5, %p65_p1 }
  0x20   : > { %p2439_p9 = por %p449_p6, %p71_p3  ;;  %p1906_p10 = scmp.ge.s32.totalorder %s2277_s29, 2 }
  0x21   : > { %s2966_s21 = scalar_select %p2432_p8, 1, 0 }
  0x22   : > { %s2968_s22 = scalar_select %p2439_p9, 1, 0 }
  0x23   : > { %2967 = sst [smem:[#allocation22_spill]] %s2966_s21  ;;  %p1968_p11 = scmp.lt.s32.totalorder %s2277_s29, 2 }
  0x24   : > { %2969 = sst [smem:[#allocation23_spill]] %s2968_s22  ;;  %s2449_s17 = sand.u32 1, %s2265_s26  }
  0x25   : > { %s2444_s23 = scalar_select %p56_p7, %s2265_s26, %s58_s19  }
  0x26   : > { %s1908_s30 = sshll.u32 %s2273_s28, 3  ;;  %s2942_s20 = sshll.u32 %s2449_s17, 3 }
  0x27   : > { %2970 = sst [smem:[#allocation24_spill]] %s2444_s23  ;;  %p2455_p12 = pnand %p1968_p11, %p2425_p4 }
  0x28   : > { %s542_s19 = sand.u32 1, %s2277_s29   ;;  %s2972_s21 = sld [smem:[#allocation26_spill]] }
  0x29   : > { %s546_s26 = scalar_lea.vmem [#allocation7], %s2942_s20  ;;  %s2465_s12 = scalar_lea.sflag [#allocation8], %s542_s19 }
  0x2a   : > { %s554_s14 = sshll.u32 %s546_s26, 4  ;;  %p72_p13 = scmp.eq.s32.totalorder %s2413_s0, 0  ;;  %s555_s14 = int_to_ptr.vmem [resolvable:$true] %s554_s14 }
  0x2b   : > { %p1904_p0 = scmp.ge.s32.totalorder %s2277_s29, 1  ;;  %p456_p1 = scmp.lt.s32.totalorder %s2277_s29, 3 }
  0x2c   : > { %p2478_p2 = por %p72_p13, %p71_p3  ;;  %s2974_s13 = sld [smem:[#allocation32_spill]] }
  0x2d   : > { %p2485_p4 = pnand %p1904_p0, %p456_p1  ;;  %s2976_s26 = sld [smem:[#allocation25_spill]] }
  0x2e   : > { %s550_s16 = scalar_lea.hbm %s2972_s21, %s1908_s30  ;;  %s2281_s29 = smov 8  }
  0x2f   : > { %s552_s27 = sshll.u32 %s550_s16, 4  ;;  %p1949_p5 = pneg %p2485_p4  ;;  %s553_s27 = int_to_ptr.hbm [resolvable:$true] %s552_s27 }
  0x30   : > { %1959 = dma.hbm_to_vmem [thread:$0]  (!%p2455_p12), %s553_s27, 128, %s555_s14, %s2465_s12  }
  0x31   : > { %s2279_s14 = smov [#allocation10]   ;;  %p1950_p3 = pnand %p1949_p5, %p72_p13 }
  0x32   : > { %s497_s21 = sshll.u32 %s2974_s13, 4  ;;  %s499_s27 = sshll.u32 %s2279_s14, 4  ;;  %s498_s21 = int_to_ptr.hbm [resolvable:$true] %s497_s21  ;;  %s500_s27 = int_to_ptr.vmem [resolvable:$true] %s499_s27 }
  0x33   : > { %s531_s16 = scalar_lea.hbm %s2976_s26, %s1908_s30  ;;  %s2280_s13 = smov 128  }
  0x34   : > { %s533_s20 = sshll.u32 %s531_s16, 4  ;;  %s2977_s24 = sshll.u32 %s2449_s17, 3  ;;  %s534_s20 = int_to_ptr.hbm [resolvable:$true] %s533_s20 }
  0x35   : > { %1952 = dma.hbm_to_vmem [thread:$0]  (!%p1950_p3), %s498_s21, 512, %s500_s27, [#allocation11], %s2280_s13, %s2280_s13, %s2281_s29  }
  0x36   : > { %s526_s11 = scalar_lea.vmem [#allocation4], %s2977_s24  ;;  %s523_s10 = scalar_lea.sflag [#allocation5], %s2449_s17 }
  0x37   : > { %s535_s15 = sshll.u32 %s526_s11, 4  ;;  %s567_s6 = scalar_lea.hbm %s2920_s2, %s2273_s28  ;;  %s536_s15 = int_to_ptr.vmem [resolvable:$true] %s535_s15 }
  0x38   : > { %1956 = dma.hbm_to_vmem [thread:$0]  (!%p2455_p12), %s534_s20, 128, %s536_s15, %s523_s10  }
  0x39   : > { %s564_s23 = scalar_lea.vmem [#allocation9], %s2449_s17  ;;  %s569_s19 = sshll.u32 %s567_s6, 4  ;;  %s570_s19 = int_to_ptr.hbm [resolvable:$true] %s569_s19 }
  0x3a   : > { %s571_s30 = sshll.u32 %s564_s23, 4  ;;  %580 = sbr.rel (%p2485_p4) target bundleno = 1973 (0x7b5), region = 88  ;;  %s572_s30 = int_to_ptr.vmem [resolvable:$true] %s571_s30 }
  0x3b   : > { %1962 = dma.hbm_to_vmem [thread:$0]  (!%p2455_p12), %s570_s19, 16, %s572_s30, %s2465_s12  }
  0x3c   : > { %s2512_s11 = sand.u32 (!%p2485_p4), 1, %s2261_s25  }
  0x3d   : > { %s2515_s10 = sshll.u32 (!%p2485_p4), %s2512_s11, 3  ;;  %s583_s9 = scalar_lea.sflag (!%p2485_p4), [#allocation5], %s2512_s11 }
  0x3e   : > { %s586_s13 = scalar_lea.vmem (!%p2485_p4), [#allocation4], %s2515_s10 }
  0x3f   : > { %2240 = dma.done.wait (%p2478_p2), %s583_s9, 128  }
  0x40   : > { %2242 = vsyncadd (%p2478_p2), %s583_s9, 4294967168  ;;  %s592_s6 = sand.u32 1, %s2413_s0   ;;  %s596_s15 = scalar_lea.vmem [#allocation7], %s2515_s10 }
  0x41   : > { %s593_s12 = scalar_lea.sflag [#allocation8], %s592_s6 }
  0x42   : > { %2244 = dma.done.wait (%p2478_p2), %s593_s12, 144  }
  0x43   : > { %2246 = vsyncadd (%p2478_p2), %s593_s12, 4294967152  ;;  %s605_s17 = scalar_lea.vmem [#allocation9], %s2512_s11 }
  0x44   : > { %2248 = dma.done.wait (%p72_p13), [#allocation11], 512  }
  0x45   : > { %2250 = vsyncadd (%p72_p13), [#allocation11], 4294966784  ;;  %vm679_vm0 = vcmask 261120   ;;  %v678_v0 = vld [vmem:[%s596_s15] sm:$0xff]  ;;  %v671_v2 = vld [vmem:[%s586_s13] sm:$0xff]  ;;  %v2282_v4 = vmov 32.0  }
  0x46   : > { %v680_v1 = vsel %vm679_vm0, %v678_v0, 0.0  ;;  %v1001_v3 = vsel %vm679_vm0, %v671_v2, 0.0  ;;  %2042 = vrcp.f32 %v2282_v4  ;;  %v720_v21 = vld [vmem:[%s2925_s7 + $0x18] sm:$0xff]  ;;  %v719_v22 = vld [vmem:[%s2925_s7 + $0x10] sm:$0xff]  ;;  %v718_v23 = vld [vmem:[%s2925_s7 + $0x8] sm:$0xff]  ;;  %s2283_s18 = smov 120  }
  0x47   : > { %681 = vadd.xlane.f32.xlu0 %v680_v1  ;;  %740 = vmatpush.msra.mxu0 %v720_v21  ;;  %v717_v24 = vld [vmem:[%s2925_s7] sm:$0xff]  ;;  %v1041_v25 = vld [vmem:[%s2923_s5 + $0x18] sm:$0xff]  ;;  %v1040_v26 = vld [vmem:[%s2923_s5 + $0x10] sm:$0xff]  ;;  %s2284_s20 = smov 104   ;;  %s2978_s22 = sld [smem:[#allocation27_spill]]  ;;  %vm759_vm8 = vcmask 1047556  }
  0x48   : > { %1061 = vmatpush.msra.mxu1 %v1041_v25  ;;  %v1039_v27 = vld [vmem:[%s2923_s5 + $0x8] sm:$0xff]  ;;  %v1038_v30 = vld [vmem:[%s2923_s5] sm:$0xff]  ;;  %s2285_s27 = smov 112   ;;  %s2286_s26 = smov 96   ;;  %v2287_v1 = vmov 1983009808  }
  0x49   : > { %741 = vmatpush.msra.mxu0 %v719_v22  ;;  %v2032_v43 = vld [vmem:[%s2921_s3] ss:$0 sm:$0xff]  ;;  %vm869_vm9 = vcmask 64512   ;;  %s2290_s16 = smov 24   ;;  %s2291_s14 = smov 8  }
  0x4a   : > { %1062 = vmatpush.msra.mxu1 %v1040_v26  ;;  %v2033_v47 = vld [vmem:[%s2922_s4] ss:$0 sm:$0xff]  ;;  %s2979_s19 = sld [smem:[#allocation28_spill]] }
  0x4b   : > { %742 = vmatpush.msra.mxu0 %v718_v23  ;;  %v2034_v57 = vld [vmem:[%s2926_s8] ss:$0 sm:$0xff]  ;;  %s2981_s21 = sld [smem:[#allocation34_spill]] }
  0x4c   : > { %v2043_v5 = vpop.eup %2042  ;;  %1063 = vmatpush.msra.mxu1 %v1039_v27  ;;  %s2982_s12 = sld [smem:[#allocation30_spill]] }
  0x4d   : > { %v684_v6 = vmul.f32 32.0, %v2043_v5  ;;  %vm688_vm1 = vweird.f32 %v2043_v5  ;;  %743 = vmatpush.msra.mxu0 %v717_v24  ;;  %v2035_v60 = vld [vmem:[%s2978_s22] ss:$0 sm:$0xff]  ;;  %s2983_s29 = sld [smem:[#allocation31_spill]] }
  0x4e   : > { %1064 = vmatpush.msra.mxu1 %v1038_v30  ;;  %s2984_s0 = sld [smem:[#allocation19_spill]] }
  0x4f   : > { %1002 = vadd.xlane.f32.xlu0 %v1001_v3  ;;  %v685_v7 = vsub.f32 1.0, %v684_v6  ;;  %s2986_s9 = sld [smem:[#allocation35_spill]] }
  0x50   : > { %s2987_s15 = sld [smem:[#allocation36_spill]] }
  0x51   : > { %v686_v8 = vmul.f32 %v2043_v5, %v685_v7 }
  0x53   : > { %v687_v9 = vadd.f32 %v2043_v5, %v686_v8 }
  0x55   : > { %v2538_v10 = vsel %vm688_vm1, %v2043_v5, %v687_v9 }
  0xba   : > { %v682_v11 = vpop.xlane.xlu0 %681 }
  0xbb   : > { %v690_v12 = vmul.f32 %v2538_v10, %v682_v11  ;;  %v2288_v11 = vmov 1934713408  }
  0xbd   : > { %v691_v13 = vsub.f32 %v678_v0, %v690_v12  ;;  %v788_v12 = vunpack.c.l.s4 %v2288_v11 }
  0xbf   : > { %v692_v14 = vmul.f32 %v691_v13, %v691_v13 }
  0xc1   : > { %v693_v15 = vsel %vm679_vm0, %v692_v14, 0.0 }
  0xc2   : > { %694 = vadd.xlane.f32.xlu1 %v693_v15  ;;  %v1003_v16 = vpop.xlane.xlu0 %1002 }
  0xc3   : > { %v1011_v17 = vmul.f32 %v1003_v16, %v2538_v10 }
  0xc5   : > { %v1012_v18 = vsub.f32 %v671_v2, %v1011_v17  ;;  %v764_v2 = vunpack.c.l.s4 %v2287_v1 }
  0xc7   : > { %v1013_v19 = vmul.f32 %v1012_v18, %v1012_v18  ;;  %v2590_v5 = vunpack.c.0.s8 %v764_v2 }
  0xc9   : > { %v1014_v20 = vsel %vm679_vm0, %v1013_v19, 0.0 }
  0xca   : > { %1015 = vadd.xlane.f32.xlu1 %v1014_v20  ;;  %v2602_v20 = vunpack.c.0.s8 %v788_v12 }
 0x135   : > { %v695_v28 = vpop.xlane.xlu1 %694 }
 0x136   : > { %v696_v29 = vmul.f32 %v695_v28, %v2538_v10 }
 0x138   : > { %v697_v31 = vadd.f32 1e-05, %v696_v29 }
 0x13a   : > { %2044 = vrsqrt.f32 %v697_v31  ;;  %vm704_vm3 = vweird.f32 %v697_v31 }
 0x13d   : > { %v1016_v32 = vpop.xlane.xlu1 %1015 }
 0x13e   : > { %v1017_v33 = vmul.f32 %v1016_v32, %v2538_v10 }
 0x140   : > { %v2045_v34 = vpop.eup %2044  ;;  %v1018_v35 = vadd.f32 1e-05, %v1017_v33 }
 0x141   : > { %v699_v36 = vmul.f32 %v2045_v34, %v697_v31  ;;  %vm705_vm2 = vweird.f32 %v2045_v34 }
 0x142   : > { %2046 = vrsqrt.f32 %v1018_v35  ;;  %vm706_vm4 = vmor %vm704_vm3, %vm705_vm2  ;;  %vm1025_vm6 = vweird.f32 %v1018_v35 }
 0x143   : > { %v700_v37 = vmul.f32 %v2045_v34, %v699_v36 }
 0x145   : > { %v701_v38 = vmul.f32 0.5, %v700_v37 }
 0x147   : > { %v702_v39 = vsub.f32 1.5, %v701_v38 }
 0x148   : > { %v2047_v40 = vpop.eup %2046 }
 0x149   : > { %v703_v41 = vmul.f32 %v2045_v34, %v702_v39  ;;  %v1020_v42 = vmul.f32 %v2047_v40, %v1018_v35  ;;  %vm1026_vm5 = vweird.f32 %v2047_v40 }
 0x14a   : > { %vm1027_vm7 = vmor %vm1025_vm6, %vm1026_vm5 }
 0x14b   : > { %v707_v44 = vsel %vm706_vm4, %v2045_v34, %v703_v41  ;;  %v1021_v45 = vmul.f32 %v2047_v40, %v1020_v42 }
 0x14c   : > { %v708_v46 = vmul.f32 %v707_v44, %v691_v13 }
 0x14d   : > { %v1022_v48 = vmul.f32 0.5, %v1021_v45 }
 0x14e   : > { %v712_v49 = vmul.f32 %v2032_v43, %v708_v46 }
 0x14f   : > { %v1023_v50 = vsub.f32 1.5, %v1022_v48 }
 0x150   : > { %v716_v51 = vadd.f32 %v2033_v47, %v712_v49 }
 0x151   : > { %v1024_v52 = vmul.f32 %v2047_v40, %v1023_v50 }
 0x152   : > { %1916 = vmatmul.msk.f32.vlgmr.msra.gmra.mxu0 %vm679_vm0, %v716_v51 }
 0x153   : > { %v1028_v53 = vsel %vm1027_vm7, %v2047_v40, %v1024_v52 }
 0x154   : > { %v1029_v54 = vmul.f32 %v1028_v53, %v1012_v18 }
 0x156   : > { %v1033_v55 = vmul.f32 %v2032_v43, %v1029_v54 }
 0x158   : > { %v1037_v56 = vadd.f32 %v2033_v47, %v1033_v55 }
 0x15a   : > { %1917 = vmatmul.msk.f32.vlgmr.msra.gmra.mxu1 %vm679_vm0, %v1037_v56 }
 0x1cf   : > { %v745_v58 = vpop.f32.mrf.mxu0 }
 0x1d0   : > { %v746_v59 = vadd.f32 %v2034_v57, %v745_v58 }
 0x1d2   : > { %749 = vrot.lane.b32.xlu2 %v746_v59, %s2283_s18  ;;  %755 = vrot.lane.b32.xlu0 %v746_v59, %s2284_s20  ;;  %v761_v4 = vrot.slane %v746_v59, 4 }
 0x1d7   : > { %v1066_v61 = vpop.f32.mrf.mxu1 }
 0x1d8   : > { %v1067_v62 = vadd.f32 %v2035_v60, %v1066_v61 }
 0x1da   : > { %752 = vrot.lane.b32.xlu2 %v746_v59, %s2285_s27  ;;  %874 = vrot.lane.b32.xlu0 %v746_v59, %s2286_s26  ;;  %v1082_v14 = vrot.slane %v1067_v62, 4 }
 0x1db   : > { %1070 = vrot.lane.b32.xlu1 %v1067_v62, %s2283_s18  ;;  %s670_s18 = scalar_lea.vmem [#allocation12], %s2515_s10  ;;  %s2207_s10 = scalar_lea.hbm %s2987_s15, 16 }
 0x1e2   : > { %1073 = vrot.lane.b32.xlu2 %v1067_v62, %s2285_s27 }
 0x1ea   : > { %1076 = vrot.lane.b32.xlu2 %v1067_v62, %s2284_s20  ;;  %s2980_s20 = sld [smem:[#allocation29_spill]] }
 0x22c   : > { %v2585_v63 = vpop.permute.xlu2 %749 }
 0x22d   : > { %v773_v15 = vrot.slane %v2585_v63, 4 }
 0x234   : > { %v2587_v0 = vpop.permute.xlu2 %752 }
 0x235   : > { %v758_v3 = vrot.slane %v2587_v0, 4  ;;  %v762_v7 = vsel %vm759_vm8, %v2587_v0, %v761_v4 }
 0x236   : > { %v770_v13 = vperm.slane %v762_v7, %v2590_v5 }
 0x237   : > { %v760_v8 = vsel %vm759_vm8, %v758_v3, %v746_v59 }
 0x238   : > { %v766_v16 = vperm.slane %v760_v8, %v2590_v5  ;;  %v797_v23 = vrot.slane %v770_v13, 4 }
 0x23a   : > { %v785_v25 = vrot.slane %v766_v16, 4 }
 0x23c   : > { %v1074_v6 = vpop.permute.xlu2 %1073 }
 0x23d   : > { %v1079_v9 = vrot.slane %v1074_v6, 4  ;;  %v1083_v17 = vsel %vm759_vm8, %v1074_v6, %v1082_v14 }
 0x23e   : > { %v1091_v26 = vperm.slane %v1083_v17, %v2590_v5 }
 0x23f   : > { %v1081_v19 = vsel %vm759_vm8, %v1079_v9, %v1067_v62 }
 0x240   : > { %v1087_v28 = vperm.slane %v1081_v19, %v2590_v5  ;;  %v1118_v41 = vrot.slane %v1091_v26, 4 }
 0x242   : > { %v1106_v40 = vrot.slane %v1087_v28, 4 }
 0x244   : > { %v2599_v18 = vpop.permute.xlu0 %755  ;;  %v1077_v32 = vpop.permute.xlu2 %1076 }
 0x245   : > { %v771_v21 = vrot.slane %v2599_v18, 4  ;;  %v774_v22 = vsel %vm759_vm8, %v2599_v18, %v773_v15  ;;  %v1092_v42 = vrot.slane %v1077_v32, 4 }
 0x246   : > { %v782_v24 = vperm.slane %v774_v22, %v2590_v5 }
 0x247   : > { %v772_v27 = vsel %vm759_vm8, %v771_v21, %v2585_v63 }
 0x248   : > { %v778_v29 = vperm.slane %v772_v27, %v2590_v5  ;;  %v795_v30 = vrot.slane %v782_v24, 4  ;;  %v798_v31 = vsel %vm759_vm8, %v782_v24, %v797_v23 }
 0x249   : > { %v806_v33 = vperm.slane %v798_v31, %v2602_v20 }
 0x24a   : > { %v783_v34 = vrot.slane %v778_v29, 4  ;;  %v786_v35 = vsel %vm759_vm8, %v778_v29, %v785_v25  ;;  %v796_v36 = vsel %vm759_vm8, %v795_v30, %v770_v13 }
 0x24b   : > { %v794_v37 = vperm.slane %v786_v35, %v2602_v20  ;;  %v802_v38 = vperm.slane %v796_v36, %v2602_v20  ;;  %v813_v39 = vrot.slane %v806_v33, 4 }
 0x24c   : > { %v784_v43 = vsel %vm759_vm8, %v783_v34, %v766_v16 }
 0x24d   : > { %v790_v44 = vperm.slane %v784_v43, %v2602_v20  ;;  %v809_v45 = vrot.slane %v794_v37, 4  ;;  %v811_v46 = vrot.slane %v802_v38, 4  ;;  %v814_v47 = vsel %vm759_vm8, 0.0, %v813_v39  ;;  %v1071_v48 = vpop.permute.xlu1 %1070 }
 0x24e   : > { %v826_v49 = vsel %vm759_vm8, %v813_v39, %v802_v38  ;;  %v831_v50 = vrot.slane %v814_v47, 4  ;;  %v1093_v51 = vsel %vm759_vm8, %v1092_v42, %v1071_v48  ;;  %v1094_v52 = vrot.slane %v1071_v48, 4 }
 0x24f   : > { %v807_v53 = vrot.slane %v790_v44, 4  ;;  %v810_v54 = vsel %vm759_vm8, 0.0, %v809_v45  ;;  %v812_v55 = vsel %vm759_vm8, 0.0, %v811_v46  ;;  %v815_v56 = vsel %vm759_vm8, %v809_v45, %v790_v44 }
 0x250   : > { %v819_v57 = vperm.slane %v815_v56, %v2590_v5  ;;  %v820_v58 = vrot.slane %v810_v54, 4  ;;  %v830_v59 = vperm.slane %v826_v49, %v2590_v5  ;;  %v832_v60 = vsel %vm759_vm8, %v831_v50, %v812_v55 }
 0x251   : > { %v808_v61 = vsel %vm759_vm8, 0.0, %v807_v53  ;;  %v836_v62 = vperm.slane %v832_v60, %v2590_v5  ;;  %v1095_v1 = vsel %vm759_vm8, %v1077_v32, %v1094_v52  ;;  %v1099_v2 = vperm.slane %v1093_v51, %v2590_v5 }
 0x252   : > { %v821_v3 = vsel %vm759_vm8, %v820_v58, %v808_v61  ;;  %v839_v4 = vrot.slane %v819_v57, 4  ;;  %v851_v6 = vrot.slane %v830_v59, 4  ;;  %v1103_v7 = vperm.slane %v1095_v1, %v2590_v5 }
 0x253   : > { %v825_v8 = vperm.slane %v821_v3, %v2590_v5  ;;  %v849_v9 = vrot.slane %v836_v62, 4  ;;  %v1104_v11 = vrot.slane %v1099_v2, 4  ;;  %v1107_v12 = vsel %vm759_vm8, %v1099_v2, %v1106_v40 }
 0x254   : > { %v852_v13 = vsel %vm759_vm8, %v836_v62, %v851_v6  ;;  %v1115_v14 = vperm.slane %v1107_v12, %v2602_v20  ;;  %v1116_v15 = vrot.slane %v1103_v7, 4  ;;  %v1119_v16 = vsel %vm759_vm8, %v1103_v7, %v1118_v41 }
 0x255   : > { %v837_v17 = vrot.slane %v825_v8, 4  ;;  %v840_v19 = vsel %vm759_vm8, %v825_v8, %v839_v4  ;;  %v850_v21 = vsel %vm759_vm8, %v849_v9, %v830_v59  ;;  %v860_v22 = vperm.slane %v852_v13, %v2602_v20 }
 0x256   : > { %v848_v23 = vperm.slane %v840_v19, %v2602_v20  ;;  %v856_v24 = vperm.slane %v850_v21, %v2602_v20  ;;  %v1105_v25 = vsel %vm759_vm8, %v1104_v11, %v1087_v28  ;;  %v1117_v27 = vsel %vm759_vm8, %v1116_v15, %v1091_v26 }
 0x257   : > { %v838_v29 = vsel %vm759_vm8, %v837_v17, %v819_v57  ;;  %v865_v30 = vrot.slane %v860_v22, 4  ;;  %v1111_v31 = vperm.slane %v1105_v25, %v2602_v20  ;;  %v1123_v32 = vperm.slane %v1117_v27, %v2602_v20 }
 0x258   : > { %v844_v33 = vperm.slane %v838_v29, %v2602_v20  ;;  %v861_v34 = vrot.slane %v856_v24, 4  ;;  %v867_v35 = vrot.slane %v848_v23, 4  ;;  %v1127_v36 = vperm.slane %v1119_v16, %v2602_v20 }
 0x259   : > { %v866_v37 = vsel %vm759_vm8, %v865_v30, %v848_v23  ;;  %v1128_v38 = vrot.slane %v1111_v31, 4  ;;  %v1130_v39 = vrot.slane %v1115_v14, 4  ;;  %v1132_v28 = vrot.slane %v1123_v32, 4 }
 0x25a   : > { %v862_v26 = vsel %vm759_vm8, %v861_v34, %v844_v33  ;;  %v863_v40 = vrot.slane %v844_v33, 4  ;;  %v868_v41 = vsel %vm759_vm8, %v860_v22, %v867_v35  ;;  %872 = vst.msk [vmem:[#allocation2 + $0x10] sm:$0xff] %vm869_vm9, %v866_v37  ;;  %v1134_v42 = vrot.slane %v1127_v36, 4 }
 0x25b   : > { %870 = vst.msk [vmem:[#allocation2] sm:$0xff] %vm869_vm9, %v862_v26  ;;  %v1129_v43 = vsel %vm759_vm8, 0.0, %v1128_v38  ;;  %v1131_v44 = vsel %vm759_vm8, 0.0, %v1130_v39  ;;  %v1136_v45 = vsel %vm759_vm8, %v1130_v39, %v1111_v31  ;;  %v1133_v49 = vsel %vm759_vm8, 0.0, %v1132_v28 }
 0x25c   : > { %v864_v46 = vsel %vm759_vm8, %v856_v24, %v863_v40  ;;  %873 = vst.msk [vmem:[#allocation2 + $0x18] sm:$0xff] %vm869_vm9, %v868_v41  ;;  %v1135_v47 = vsel %vm759_vm8, 0.0, %v1134_v42  ;;  %v1141_v48 = vrot.slane %v1131_v44, 4  ;;  %v1140_v51 = vperm.slane %v1136_v45, %v2590_v5  ;;  %v2036_v24 = vld [vmem:[%s605_s17] ss:$0 sm:$0xff]  ;;  %s2289_s17 = smov 16  }
 0x25d   : > { %871 = vst.msk [vmem:[#allocation2 + $0x8] sm:$0xff] %vm869_vm9, %v864_v46  ;;  %v1152_v50 = vrot.slane %v1135_v47, 4  ;;  %v1147_v52 = vsel %vm759_vm8, %v1134_v42, %v1123_v32 }
 0x25e   : > { %v1142_v53 = vsel %vm759_vm8, %v1141_v48, %v1129_v43  ;;  %v1151_v54 = vperm.slane %v1147_v52, %v2590_v5  ;;  %v1160_v57 = vrot.slane %v1140_v51, 4  ;;  %v875_v43 = vpop.permute.xlu0 %874 }
 0x25f   : > { %v1146_v55 = vperm.slane %v1142_v53, %v2590_v5  ;;  %v1153_v56 = vsel %vm759_vm8, %v1152_v50, %v1133_v49 }
 0x260   : > { %v1157_v58 = vperm.slane %v1153_v56, %v2590_v5  ;;  %v1172_v59 = vrot.slane %v1151_v54, 4 }
 0x261   : > { %v1192_v60 = vld [vmem:[#allocation2 + $0x10] sm:$0xff]  ;;  %v1158_v61 = vrot.slane %v1146_v55, 4  ;;  %v1161_v1 = vsel %vm759_vm8, %v1146_v55, %v1160_v57  ;;  %v888_v55 = vrot.slane %v875_v43, 4 }
 0x262   : > { %1922 = vmatpush.xpose.msk.msra.mxu2 %vm869_vm9, %v1192_v60  ;;  %v1190_v62 = vld [vmem:[#allocation2] sm:$0xff]  ;;  %v1173_v2 = vsel %vm759_vm8, %v1157_v58, %v1172_v59  ;;  %v1170_v3 = vrot.slane %v1157_v58, 4  ;;  %v1169_v9 = vperm.slane %v1161_v1, %v2602_v20 }
 0x263   : > { %1918 = vmatpush.xpose.msk.msra.mxu3 %vm869_vm9, %v1190_v62  ;;  %v1181_v4 = vperm.slane %v1173_v2, %v2602_v20  ;;  %v1159_v7 = vsel %vm759_vm8, %v1158_v61, %v1140_v51  ;;  %v1193_v17 = vld [vmem:[#allocation2 + $0x18] sm:$0xff] }
 0x264   : > { %v1191_v6 = vld [vmem:[#allocation2 + $0x8] sm:$0xff]  ;;  %v1171_v8 = vsel %vm759_vm8, %v1170_v3, %v1151_v54  ;;  %v1165_v14 = vperm.slane %v1159_v7, %v2602_v20  ;;  %v1188_v22 = vrot.slane %v1169_v9, 4 }
 0x265   : > { %v1186_v11 = vrot.slane %v1181_v4, 4  ;;  %v1177_v12 = vperm.slane %v1171_v8, %v2602_v20 }
 0x266   : > { %v1184_v19 = vrot.slane %v1165_v14, 4  ;;  %v1189_v23 = vsel %vm759_vm8, %v1181_v4, %v1188_v22 }
 0x267   : > { %1920 = vmatpush.xpose.msk.msrb.mxu3 %vm869_vm9, %v1191_v6  ;;  %v1187_v13 = vsel %vm759_vm8, %v1186_v11, %v1169_v9  ;;  %v1182_v15 = vrot.slane %v1177_v12, 4 }
 0x268   : > { %1923 = vmatmul.msk.f32.vlgmr.msra.gmra.mxu2 %vm869_vm9, %v1187_v13  ;;  %v1185_v21 = vsel %vm759_vm8, %v1177_v12, %v1184_v19 }
 0x269   : > { %v1183_v16 = vsel %vm759_vm8, %v1182_v15, %v1165_v14 }
 0x26a   : > { %1919 = vmatmul.msk.f32.vlgmr.msra.gmra.mxu3 %vm869_vm9, %v1183_v16 }
 0x26b   : > { %1924 = vmatpush.xpose.msk.msra.mxu3 %vm869_vm9, %v1193_v17 }
 0x272   : > { %1921 = vmatmul.msk.f32.vlgmr.msrb.gmra.mxu3 %vm869_vm9, %v1185_v21 }
 0x27a   : > { %1925 = vmatmul.msk.f32.vlgmr.msra.gmra.mxu3 %vm869_vm9, %v1189_v23 }
 0x2eb   : > { %v1274_v25 = vpop.f32.mrf.mxu2 }
 0x2ec   : > { %v1275_v27 = vadd.f32 %v2036_v24, %v1274_v25 }
 0x2ed   : > { %v1222_v29 = vpop.f32.mrf.mxu3 }
 0x2ee   : > { %v1223_v30 = vadd.f32 %v2036_v24, %v1222_v29  ;;  %v1309_v31 = vsel %vm869_vm9, %v1275_v27, -inf }
 0x2ef   : > { %1310 = vmax.xlane.f32.xlu2 %v1309_v31 }
 0x2f0   : > { %v1303_v32 = vsel %vm869_vm9, %v1223_v30, -inf }
 0x2f1   : > { %1304 = vmax.xlane.f32.xlu1 %v1303_v32 }
 0x2f5   : > { %v1248_v33 = vpop.f32.mrf.mxu3 }
 0x2f6   : > { %v1249_v34 = vadd.f32 %v2036_v24, %v1248_v33 }
 0x2f8   : > { %v1306_v35 = vsel %vm869_vm9, %v1249_v34, -inf }
 0x2f9   : > { %1307 = vmax.xlane.f32.xlu2 %v1306_v35 }
 0x2fd   : > { %v1300_v36 = vpop.f32.mrf.mxu3 }
 0x2fe   : > { %v1301_v37 = vadd.f32 %v2036_v24, %v1300_v36 }
 0x300   : > { %v1312_v38 = vsel %vm869_vm9, %v1301_v37, -inf }
 0x301   : > { %1313 = vmax.xlane.f32.xlu0 %v1312_v38 }
 0x30a   : > { %878 = vrot.lane.b32.xlu1 %v2587_v0, %s2286_s26 }
 0x311   : > { %876 = vrot.lane.b32.xlu2 %v2585_v63, %s2286_s26 }
 0x315   : > { %880 = vrot.lane.b32.xlu0 %v2599_v18, %s2286_s26 }
 0x362   : > { %v1311_v39 = vpop.xlane.xlu2 %1310 }
 0x363   : > { %v1317_v28 = vsub.f32 %v1275_v27, %v1311_v39 }
 0x364   : > { %v1305_v26 = vpop.xlane.xlu1 %1304 }
 0x365   : > { %v1323_v40 = vmul.f32 1.442695, %v1317_v28  ;;  %v1315_v41 = vsub.f32 %v1223_v30, %v1305_v26 }
 0x367   : > { %2048 = vpow2.f32 %v1323_v40  ;;  %v1319_v42 = vmul.f32 1.442695, %v1315_v41 }
 0x369   : > { %2050 = vpow2.f32 %v1319_v42 }
 0x36c   : > { %v1308_v44 = vpop.xlane.xlu2 %1307 }
 0x36d   : > { %v2705_v45 = vpop.eup %2048  ;;  %v1316_v46 = vsub.f32 %v1249_v34, %v1308_v44 }
 0x36e   : > { %v1333_v0 = vsel %vm869_vm9, %v2705_v45, 0.0 }
 0x36f   : > { %v2709_v63 = vpop.eup %2050  ;;  %v1321_v47 = vmul.f32 1.442695, %v1316_v46  ;;  %1334 = vadd.xlane.f32.xlu2 %v1333_v0 }
 0x370   : > { %v1327_v18 = vsel %vm869_vm9, %v2709_v63, 0.0 }
 0x371   : > { %2052 = vpow2.f32 %v1321_v47  ;;  %1328 = vadd.xlane.f32.xlu1 %v1327_v18 }
 0x374   : > { %v1314_v48 = vpop.xlane.xlu0 %1313  ;;  %v877_v59 = vpop.permute.xlu2 %876 }
 0x375   : > { %v1318_v49 = vsub.f32 %v1301_v37, %v1314_v48  ;;  %v900_v62 = vrot.slane %v877_v59, 4 }
 0x377   : > { %v2713_v50 = vpop.eup %2052  ;;  %v1325_v51 = vmul.f32 1.442695, %v1318_v49 }
 0x378   : > { %v1330_v52 = vsel %vm869_vm9, %v2713_v50, 0.0 }
 0x379   : > { %2054 = vpow2.f32 %v1325_v51  ;;  %1331 = vadd.xlane.f32.xlu2 %v1330_v52 }
 0x37c   : > { %v879_v53 = vpop.permute.xlu1 %878 }
 0x37d   : > { %v886_v56 = vrot.slane %v879_v53, 4  ;;  %v889_v58 = vsel %vm759_vm8, %v879_v53, %v888_v55 }
 0x37e   : > { %v897_v61 = vperm.slane %v889_v58, %v2590_v5 }
 0x37f   : > { %v2717_v54 = vpop.eup %2054  ;;  %v887_v60 = vsel %vm759_vm8, %v886_v56, %v875_v43 }
 0x380   : > { %v1336_v57 = vsel %vm869_vm9, %v2717_v54, 0.0  ;;  %v893_v1 = vperm.slane %v887_v60, %v2590_v5  ;;  %v924_v6 = vrot.slane %v897_v61, 4 }
 0x381   : > { %1337 = vadd.xlane.f32.xlu0 %v1336_v57 }
 0x382   : > { %v912_v9 = vrot.slane %v893_v1, 4 }
 0x387   : > { %v881_v2 = vpop.permute.xlu0 %880 }
 0x388   : > { %v898_v3 = vrot.slane %v881_v2, 4  ;;  %v901_v4 = vsel %vm759_vm8, %v881_v2, %v900_v62 }
 0x389   : > { %v909_v7 = vperm.slane %v901_v4, %v2590_v5 }
 0x38a   : > { %v899_v8 = vsel %vm759_vm8, %v898_v3, %v877_v59 }
 0x38b   : > { %v905_v11 = vperm.slane %v899_v8, %v2590_v5  ;;  %v922_v12 = vrot.slane %v909_v7, 4  ;;  %v925_v13 = vsel %vm759_vm8, %v909_v7, %v924_v6 }
 0x38c   : > { %v933_v14 = vperm.slane %v925_v13, %v2602_v20 }
 0x38d   : > { %v910_v15 = vrot.slane %v905_v11, 4  ;;  %v913_v16 = vsel %vm759_vm8, %v905_v11, %v912_v9  ;;  %v923_v17 = vsel %vm759_vm8, %v922_v12, %v897_v61 }
 0x38e   : > { %v921_v19 = vperm.slane %v913_v16, %v2602_v20  ;;  %v929_v21 = vperm.slane %v923_v17, %v2602_v20  ;;  %v940_v22 = vrot.slane %v933_v14, 4 }
 0x38f   : > { %v911_v23 = vsel %vm759_vm8, %v910_v15, %v893_v1 }
 0x390   : > { %v917_v24 = vperm.slane %v911_v23, %v2602_v20  ;;  %v936_v25 = vrot.slane %v921_v19, 4  ;;  %v938_v27 = vrot.slane %v929_v21, 4  ;;  %v941_v29 = vsel %vm759_vm8, 0.0, %v940_v22 }
 0x391   : > { %v953_v30 = vsel %vm759_vm8, %v940_v22, %v929_v21  ;;  %v958_v31 = vrot.slane %v941_v29, 4 }
 0x392   : > { %v934_v32 = vrot.slane %v917_v24, 4  ;;  %v937_v33 = vsel %vm759_vm8, 0.0, %v936_v25  ;;  %v939_v34 = vsel %vm759_vm8, 0.0, %v938_v27  ;;  %v942_v35 = vsel %vm759_vm8, %v936_v25, %v917_v24 }
 0x393   : > { %v946_v36 = vperm.slane %v942_v35, %v2590_v5  ;;  %v947_v37 = vrot.slane %v937_v33, 4  ;;  %v957_v38 = vperm.slane %v953_v30, %v2590_v5  ;;  %v959_v39 = vsel %vm759_vm8, %v958_v31, %v939_v34 }
 0x394   : > { %v935_v28 = vsel %vm759_vm8, 0.0, %v934_v32  ;;  %v963_v26 = vperm.slane %v959_v39, %v2590_v5 }
 0x395   : > { %v948_v40 = vsel %vm759_vm8, %v947_v37, %v935_v28  ;;  %v966_v41 = vrot.slane %v946_v36, 4  ;;  %v978_v42 = vrot.slane %v957_v38, 4 }
 0x396   : > { %v952_v43 = vperm.slane %v948_v40, %v2590_v5  ;;  %v976_v44 = vrot.slane %v963_v26, 4 }
 0x397   : > { %v979_v46 = vsel %vm759_vm8, %v963_v26, %v978_v42 }
 0x398   : > { %v964_v0 = vrot.slane %v952_v43, 4  ;;  %v967_v47 = vsel %vm759_vm8, %v952_v43, %v966_v41  ;;  %v977_v18 = vsel %vm759_vm8, %v976_v44, %v957_v38  ;;  %v987_v48 = vperm.slane %v979_v46, %v2602_v20 }
 0x399   : > { %v975_v49 = vperm.slane %v967_v47, %v2602_v20  ;;  %v983_v51 = vperm.slane %v977_v18, %v2602_v20 }
 0x39a   : > { %v965_v52 = vsel %vm759_vm8, %v964_v0, %v946_v36  ;;  %v992_v53 = vrot.slane %v987_v48, 4 }
 0x39b   : > { %v971_v55 = vperm.slane %v965_v52, %v2602_v20  ;;  %v988_v56 = vrot.slane %v983_v51, 4  ;;  %v994_v57 = vrot.slane %v975_v49, 4 }
 0x39c   : > { %v993_v58 = vsel %vm759_vm8, %v992_v53, %v975_v49 }
 0x39d   : > { %v989_v59 = vsel %vm759_vm8, %v988_v56, %v971_v55  ;;  %v990_v60 = vrot.slane %v971_v55, 4  ;;  %v995_v61 = vsel %vm759_vm8, %v987_v48, %v994_v57  ;;  %998 = vst.msk [vmem:[#allocation3 + $0x10] sm:$0xff] %vm869_vm9, %v993_v58 }
 0x39e   : > { %996 = vst.msk [vmem:[#allocation3] sm:$0xff] %vm869_vm9, %v989_v59 }
 0x39f   : > { %v991_v62 = vsel %vm759_vm8, %v983_v51, %v990_v60  ;;  %999 = vst.msk [vmem:[#allocation3 + $0x18] sm:$0xff] %vm869_vm9, %v995_v61 }
 0x3a0   : > { %997 = vst.msk [vmem:[#allocation3 + $0x8] sm:$0xff] %vm869_vm9, %v991_v62 }
 0x3a4   : > { %v1401_v1 = vld [vmem:[#allocation3 + $0x10] sm:$0xff] }
 0x3a5   : > { %1467 = vmatpush.msrb.mxu2 %v1401_v1  ;;  %v1399_v2 = vld [vmem:[#allocation3] sm:$0xff] }
 0x3a6   : > { %1421 = vmatpush.msrb.mxu0 %v1399_v2  ;;  %v1402_v3 = vld [vmem:[#allocation3 + $0x18] sm:$0xff] }
 0x3a7   : > { %1490 = vmatpush.msrb.mxu3 %v1402_v3  ;;  %v1400_v4 = vld [vmem:[#allocation3 + $0x8] sm:$0xff] }
 0x3a8   : > { %1444 = vmatpush.msrb.mxu1 %v1400_v4 }
 0x3e2   : > { %v1335_v6 = vpop.xlane.xlu2 %1334 }
 0x3e3   : > { %2056 = vrcp.f32 %v1335_v6  ;;  %v1378_v15 = vand.u32 2147483648, %v1335_v6  ;;  %v1376_v17 = vand.u32 2147483647, %v1335_v6  ;;  %vm1372_vm11 = vweird.f32 %v1335_v6 }
 0x3e4   : > { %v1329_v7 = vpop.xlane.xlu1 %1328 }
 0x3e5   : > { %2058 = vrcp.f32 %v1329_v7  ;;  %v1350_v23 = vand.u32 2147483648, %v1329_v7  ;;  %v1379_v24 = vor.u32 1.1754944e-38, %v1378_v15  ;;  %v1348_v25 = vand.u32 2147483647, %v1329_v7 }
 0x3e6   : > { %vm1377_vm14 = vcmp.eq.f32.partialorder %v1376_v17, 8.507059e+37  ;;  %vm1344_vm15 = vweird.f32 %v1329_v7 }
 0x3e7   : > { %v1351_v32 = vor.u32 1.1754944e-38, %v1350_v23  ;;  %vm1349_vm2 = vcmp.eq.f32.partialorder %v1348_v25, 8.507059e+37 }
 0x3e9   : > { %v2057_v8 = vpop.eup %2056 }
 0x3ea   : > { %v1368_v9 = vmul.f32 %v2057_v8, %v1335_v6  ;;  %vm1373_vm10 = vweird.f32 %v2057_v8 }
 0x3eb   : > { %v2059_v11 = vpop.eup %2058  ;;  %vm1374_vm13 = vmor %vm1372_vm11, %vm1373_vm10 }
 0x3ec   : > { %v1369_v12 = vsub.f32 1.0, %v1368_v9  ;;  %v1340_v13 = vmul.f32 %v2059_v11, %v1329_v7  ;;  %v1332_v14 = vpop.xlane.xlu2 %1331  ;;  %vm1345_vm12 = vweird.f32 %v2059_v11 }
 0x3ed   : > { %2060 = vrcp.f32 %v1332_v14  ;;  %vm1346_vm1 = vmor %vm1344_vm15, %vm1345_vm12  ;;  %v1364_v39 = vand.u32 2147483648, %v1332_v14  ;;  %v1362_v40 = vand.u32 2147483647, %v1332_v14  ;;  %vm1358_vm4 = vweird.f32 %v1332_v14 }
 0x3ee   : > { %v1370_v16 = vmul.f32 %v2057_v8, %v1369_v12  ;;  %v1341_v19 = vsub.f32 1.0, %v1340_v13 }
 0x3ef   : > { %vm1363_vm6 = vcmp.eq.f32.partialorder %v1362_v40, 8.507059e+37 }
 0x3f0   : > { %v1371_v21 = vadd.f32 %v2057_v8, %v1370_v16  ;;  %v1342_v22 = vmul.f32 %v2059_v11, %v1341_v19 }
 0x3f2   : > { %v1343_v27 = vadd.f32 %v2059_v11, %v1342_v22  ;;  %v1375_v29 = vsel %vm1374_vm13, %v2057_v8, %v1371_v21  ;;  %vm1620_vm13 = vcmask 195584  }
 0x3f3   : > { %v2061_v30 = vpop.eup %2060  ;;  %v1380_v31 = vsel %vm1377_vm14, %v1379_v24, %v1375_v29 }
 0x3f4   : > { %v1354_v33 = vmul.f32 %v2061_v30, %v1332_v14  ;;  %v1338_v34 = vpop.xlane.xlu0 %1337  ;;  %v1397_v35 = vmul.f32 %v2705_v45, %v1380_v31  ;;  %v1347_v36 = vsel %vm1346_vm1, %v2059_v11, %v1343_v27  ;;  %vm1359_vm3 = vweird.f32 %v2061_v30 }
 0x3f5   : > { %2062 = vrcp.f32 %v1338_v34  ;;  %v1352_v38 = vsel %vm1349_vm2, %v1351_v32, %v1347_v36  ;;  %vm1360_vm5 = vmor %vm1358_vm4, %vm1359_vm3  ;;  %v1365_v45 = vor.u32 1.1754944e-38, %v1364_v39  ;;  %v1392_v18 = vand.u32 2147483648, %v1338_v34 }
 0x3f6   : > { %v1355_v37 = vsub.f32 1.0, %v1354_v33  ;;  %1928 = vmatmul.msk.f32.vlgmr.msrb.gmra.mxu2 %vm869_vm9, %v1397_v35  ;;  %v1395_v28 = vmul.f32 %v2709_v63, %v1352_v38  ;;  %v1390_v63 = vand.u32 2147483647, %v1338_v34  ;;  %vm1386_vm10 = vweird.f32 %v1338_v34 }
 0x3f7   : > { %v1393_v51 = vor.u32 1.1754944e-38, %v1392_v18  ;;  %vm1730_vm1 = vcmask 523264  }
 0x3f8   : > { %v1356_v26 = vmul.f32 %v2061_v30, %v1355_v37  ;;  %1926 = vmatmul.msk.f32.vlgmr.msrb.gmra.mxu0 %vm869_vm9, %v1395_v28  ;;  %vm1391_vm12 = vcmp.eq.f32.partialorder %v1390_v63, 8.507059e+37 }
 0x3fa   : > { %v1357_v41 = vadd.f32 %v2061_v30, %v1356_v26 }
 0x3fb   : > { %v2063_v42 = vpop.eup %2062 }
 0x3fc   : > { %v1382_v43 = vmul.f32 %v2063_v42, %v1338_v34  ;;  %v1361_v44 = vsel %vm1360_vm5, %v2061_v30, %v1357_v41  ;;  %vm1387_vm7 = vweird.f32 %v2063_v42 }
 0x3fd   : > { %v1366_v46 = vsel %vm1363_vm6, %v1365_v45, %v1361_v44  ;;  %vm1388_vm11 = vmor %vm1386_vm10, %vm1387_vm7 }
 0x3fe   : > { %v1383_v0 = vsub.f32 1.0, %v1382_v43  ;;  %v1396_v47 = vmul.f32 %v2713_v50, %v1366_v46 }
 0x400   : > { %v1384_v48 = vmul.f32 %v2063_v42, %v1383_v0  ;;  %1927 = vmatmul.msk.f32.vlgmr.msrb.gmra.mxu1 %vm869_vm9, %v1396_v47 }
 0x402   : > { %v1385_v49 = vadd.f32 %v2063_v42, %v1384_v48 }
 0x404   : > { %v1389_v52 = vsel %vm1388_vm11, %v2063_v42, %v1385_v49 }
 0x405   : > { %v1394_v53 = vsel %vm1391_vm12, %v1393_v51, %v1389_v52 }
 0x406   : > { %v1398_v55 = vmul.f32 %v2717_v54, %v1394_v53 }
 0x408   : > { %1929 = vmatmul.msk.f32.vlgmr.msrb.gmra.mxu3 %vm869_vm9, %v1398_v55 }
 0x475   : > { %v1423_v56 = vpop.f32.mrf.mxu0 }
 0x476   : > { %v1497_v50 = vrot.slane %v1423_v56, 4 }
 0x479   : > { %v1469_v57 = vpop.f32.mrf.mxu2 }
 0x47a   : > { %v1495_v58 = vrot.slane %v1469_v57, 4  ;;  %v1498_v59 = vsel %vm759_vm8, %v1469_v57, %v1497_v50 }
 0x47b   : > { %v1506_v62 = vperm.slane %v1498_v59, %v2590_v5  ;;  %v1625_v59 = vld [vmem:[%s2979_s19 + $0x18] sm:$0xff] }
 0x47c   : > { %v1496_v61 = vsel %vm759_vm8, %v1495_v58, %v1423_v56  ;;  %1645 = vmatpush.msra.mxu0 %v1625_v59 }
 0x47d   : > { %v1446_v60 = vpop.f32.mrf.mxu1  ;;  %v1502_v2 = vperm.slane %v1496_v61, %v2590_v5  ;;  %v1533_v6 = vrot.slane %v1506_v62, 4  ;;  %v1622_v61 = vld [vmem:[%s2979_s19] sm:$0xff] }
 0x47e   : > { %v1509_v1 = vrot.slane %v1446_v60, 4 }
 0x47f   : > { %v1521_v9 = vrot.slane %v1502_v2, 4 }
 0x48b   : > { %v1492_v3 = vpop.f32.mrf.mxu3 }
 0x48c   : > { %v1507_v4 = vrot.slane %v1492_v3, 4  ;;  %v1510_v54 = vsel %vm759_vm8, %v1492_v3, %v1509_v1 }
 0x48d   : > { %v1518_v7 = vperm.slane %v1510_v54, %v2590_v5 }
 0x48e   : > { %v1508_v8 = vsel %vm759_vm8, %v1507_v4, %v1446_v60  ;;  %v1623_v60 = vld [vmem:[%s2979_s19 + $0x8] sm:$0xff] }
 0x48f   : > { %v1514_v11 = vperm.slane %v1508_v8, %v2590_v5  ;;  %v1531_v12 = vrot.slane %v1518_v7, 4  ;;  %v1534_v13 = vsel %vm759_vm8, %v1518_v7, %v1533_v6  ;;  %v2037_v6 = vld [vmem:[%s2980_s20] ss:$0 sm:$0xff]  ;;  %s1770_s20 = sshll.u32 %s670_s18, 4  ;;  %s1771_s20 = int_to_ptr.vmem [resolvable:$true] %s1770_s20 }
 0x490   : > { %v1542_v14 = vperm.slane %v1534_v13, %v2602_v20 }
 0x491   : > { %v1519_v15 = vrot.slane %v1514_v11, 4  ;;  %v1522_v16 = vsel %vm759_vm8, %v1514_v11, %v1521_v9  ;;  %v1532_v17 = vsel %vm759_vm8, %v1531_v12, %v1506_v62  ;;  %v2066_v9 = vld [vmem:[%s586_s13] sm:$0xff] }
 0x492   : > { %v1530_v19 = vperm.slane %v1522_v16, %v2602_v20  ;;  %v1538_v21 = vperm.slane %v1532_v17, %v2602_v20  ;;  %v1549_v22 = vrot.slane %v1542_v14, 4 }
 0x493   : > { %v1520_v23 = vsel %vm759_vm8, %v1519_v15, %v1502_v2 }
 0x494   : > { %v1526_v24 = vperm.slane %v1520_v23, %v2602_v20  ;;  %v1545_v25 = vrot.slane %v1530_v19, 4  ;;  %v1547_v27 = vrot.slane %v1538_v21, 4  ;;  %v1550_v29 = vsel %vm759_vm8, 0.0, %v1549_v22  ;;  %v1689_v19 = vld [vmem:[#allocation10 + $0x18] sm:$0xff]  ;;  %v1686_v23 = vld [vmem:[#allocation10] sm:$0xff] }
 0x495   : > { %v1562_v30 = vsel %vm759_vm8, %v1549_v22, %v1538_v21  ;;  %v1567_v31 = vrot.slane %v1550_v29, 4  ;;  %v1688_v21 = vld [vmem:[#allocation10 + $0x10] sm:$0xff]  ;;  %1709 = vmatpush.msra.mxu1 %v1689_v19  ;;  %v1687_v22 = vld [vmem:[#allocation10 + $0x8] sm:$0xff] }
 0x496   : > { %v1543_v32 = vrot.slane %v1526_v24, 4  ;;  %v1546_v33 = vsel %vm759_vm8, 0.0, %v1545_v25  ;;  %v1548_v34 = vsel %vm759_vm8, 0.0, %v1547_v27  ;;  %v1566_v35 = vperm.slane %v1562_v30, %v2590_v5  ;;  %v1723_v27 = vld [vmem:[%s2981_s21 + $0x28] sm:$0xff] }
 0x497   : > { %v1556_v36 = vrot.slane %v1546_v33, 4  ;;  %v1551_v37 = vsel %vm759_vm8, %v1545_v25, %v1526_v24  ;;  %v1568_v38 = vsel %vm759_vm8, %v1567_v31, %v1548_v34  ;;  %1710 = vmatpush.msra.mxu1 %v1688_v21  ;;  %v1725_v24 = vld [vmem:[%s2981_s21 + $0x38] sm:$0xff]  ;;  %v1724_v25 = vld [vmem:[%s2981_s21 + $0x30] sm:$0xff]  ;;  %v1722_v31 = vld [vmem:[%s2981_s21 + $0x20] sm:$0xff] }
 0x498   : > { %v1544_v39 = vsel %vm759_vm8, 0.0, %v1543_v32  ;;  %v1555_v28 = vperm.slane %v1551_v37, %v2590_v5  ;;  %v1572_v26 = vperm.slane %v1568_v38, %v2590_v5  ;;  %v1587_v40 = vrot.slane %v1566_v35, 4  ;;  %1742 = vmatpush.msra.mxu2 %v1725_v24  ;;  %v1721_v33 = vld [vmem:[%s2981_s21 + $0x18] sm:$0xff] }
 0x499   : > { %v1557_v41 = vsel %vm759_vm8, %v1556_v36, %v1544_v39  ;;  %1711 = vmatpush.msra.mxu1 %v1687_v22  ;;  %v2038_v39 = vld [vmem:[%s2982_s12] ss:$0 sm:$0xff] }
 0x49a   : > { %v1561_v42 = vperm.slane %v1557_v41, %v2590_v5  ;;  %v1575_v45 = vrot.slane %v1555_v28, 4  ;;  %v1588_v43 = vsel %vm759_vm8, %v1572_v26, %v1587_v40  ;;  %v1585_v44 = vrot.slane %v1572_v26, 4  ;;  %1743 = vmatpush.msra.mxu2 %v1724_v25  ;;  %v2039_v40 = vld [vmem:[%s2983_s29] ss:$0 sm:$0xff] }
 0x49b   : > { %v1596_v46 = vperm.slane %v1588_v43, %v2602_v20  ;;  %1712 = vmatpush.msra.mxu1 %v1686_v23  ;;  %v1719_v43 = vld [vmem:[%s2981_s21 + $0x8] sm:$0xff] }
 0x49c   : > { %v1576_v0 = vsel %vm759_vm8, %v1561_v42, %v1575_v45  ;;  %v1573_v47 = vrot.slane %v1561_v42, 4  ;;  %v1586_v18 = vsel %vm759_vm8, %v1585_v44, %v1566_v35  ;;  %1744 = vmatpush.msra.mxu2 %v1723_v27  ;;  %v1720_v45 = vld [vmem:[%s2981_s21 + $0x10] sm:$0xff]  ;;  %v1718_v44 = vld [vmem:[%s2981_s21] sm:$0xff] }
 0x49d   : > { %v1584_v48 = vperm.slane %v1576_v0, %v2602_v20  ;;  %v1601_v63 = vrot.slane %v1596_v46, 4  ;;  %v1592_v49 = vperm.slane %v1586_v18, %v2602_v20 }
 0x49e   : > { %v1574_v51 = vsel %vm759_vm8, %v1573_v47, %v1555_v28  ;;  %1745 = vmatpush.msra.mxu2 %v1722_v31 }
 0x49f   : > { %v1602_v5 = vsel %vm759_vm8, %v1601_v63, %v1584_v48  ;;  %v1603_v52 = vrot.slane %v1584_v48, 4  ;;  %v1580_v53 = vperm.slane %v1574_v51, %v2602_v20  ;;  %v1597_v55 = vrot.slane %v1592_v49, 4  ;;  %v1624_v20 = vld [vmem:[%s2979_s19 + $0x10] sm:$0xff]  ;;  %v2041_v48 = vld [vmem:[%s2986_s9] ss:$0 sm:$0xff] }
 0x4a0   : > { %1610 = vrot.lane.b32.xlu1 %v1602_v5, %s2289_s17  ;;  %1646 = vmatpush.msra.mxu0 %v1624_v20 }
 0x4a1   : > { %v1604_v56 = vsel %vm759_vm8, %v1596_v46, %v1603_v52  ;;  %v1599_v57 = vrot.slane %v1580_v53, 4  ;;  %v1598_v50 = vsel %vm759_vm8, %v1597_v55, %v1580_v53  ;;  %1746 = vmatpush.msra.mxu2 %v1721_v33 }
 0x4a2   : > { %1614 = vrot.lane.b32.xlu2 %v1604_v56, %s2290_s16  ;;  %1647 = vmatpush.msra.mxu0 %v1623_v60  ;;  %s2985_s16 = sld [smem:[#allocation33_spill]] }
 0x4a3   : > { %v1600_v58 = vsel %vm759_vm8, %v1592_v49, %v1599_v57  ;;  %vm1618_vm8 = vcmask 130048   ;;  %1747 = vmatpush.msra.mxu2 %v1720_v45 }
 0x4a4   : > { %1606 = vrot.lane.b32.xlu0 %v1600_v58, %s2291_s14  ;;  %1648 = vmatpush.msra.mxu0 %v1622_v61  ;;  %s1934_s14 = sshll.u32 %s2984_s0, 3  ;;  %s1757_s0 = scalar_lea.sflag [#allocation6], %s2512_s11 }
 0x4a5   : > { %1748 = vmatpush.msra.mxu2 %v1719_v43  ;;  %s1768_s29 = scalar_lea.hbm %s2987_s15, %s1934_s14 }
 0x4a6   : > { %s1772_s13 = sshll.u32 %s1768_s29, 4  ;;  %s1773_s13 = int_to_ptr.hbm [resolvable:$true] %s1772_s13 }
 0x4a7   : > { %1749 = vmatpush.msra.mxu2 %v1718_v44  ;;  %s2201_s1 = sshra.s32 %s1773_s13, 4  ;;  %s2202_s1 = int_to_ptr.hbm [resolvable:$true] %s2201_s1 }
 0x4a8   : > { %v2040_v46 = vld [vmem:[%s2985_s16] ss:$0 sm:$0xff]  ;;  %s2203_s22 = scalar_lea.hbm %s2202_s1, 8  ;;  %p2208_p12 = scmp.lt.s32.totalorder %s2202_s1, %s2987_s15 }
 0x4a9   : > { %p2204_p6 = scmp.ne.s32.totalorder %s2202_s1, %s2203_s22  ;;  %p2209_p13 = scmp.lt.s32.totalorder %s2207_s10, %s2203_s22 }
 0x4ab   : > { %p2205_p7 = pnand %p2204_p6, %p2432_p8  ;;  %p2210_p0 = por %p2209_p13, %p2208_p12 }
 0x4ad   : > { %p2206_p11 = pneg %p2205_p7 }
 0x4af   : > { %p2211_p1 = pnand %p2210_p0, %p2206_p11 }
 0x4fc   : > { %v1615_v3 = vpop.permute.xlu2 %1614 }
 0x512   : > { %v1611_v1 = vpop.permute.xlu1 %1610 }
 0x516   : > { %v1607_v62 = vpop.permute.xlu0 %1606 }
 0x517   : > { %v1617_v2 = vsel %vm869_vm9, %v1598_v50, %v1607_v62 }
 0x518   : > { %v1619_v4 = vsel %vm1618_vm8, %v1617_v2, %v1611_v1 }
 0x519   : > { %v1621_v54 = vsel %vm1620_vm13, %v1619_v4, %v1615_v3 }
 0x51a   : > { %1930 = vmatmul.msk.f32.vlgmr.msra.gmra.mxu0 %vm679_vm0, %v1621_v54 }
 0x597   : > { %v1650_v7 = vpop.f32.mrf.mxu0 }
 0x598   : > { %v1651_v8 = vadd.f32 %v2037_v6, %v1650_v7 }
 0x59a   : > { %v2832_v11 = vadd.f32 %v2066_v9, %v1651_v8 }
 0x59c   : > { %v1656_v12 = vsel %vm679_vm0, %v2832_v11, 0.0 }
 0x59d   : > { %1657 = vadd.xlane.f32.xlu0 %v1656_v12 }
 0x610   : > { %v1658_v13 = vpop.xlane.xlu0 %1657 }
 0x611   : > { %v1659_v14 = vmul.f32 %v1658_v13, %v2538_v10 }
 0x613   : > { %v1660_v15 = vsub.f32 %v2832_v11, %v1659_v14 }
 0x615   : > { %v1661_v16 = vmul.f32 %v1660_v15, %v1660_v15 }
 0x617   : > { %v1662_v17 = vsel %vm679_vm0, %v1661_v16, 0.0 }
 0x618   : > { %1663 = vadd.xlane.f32.xlu1 %v1662_v17 }
 0x68b   : > { %v1664_v29 = vpop.xlane.xlu1 %1663 }
 0x68c   : > { %v1665_v30 = vmul.f32 %v1664_v29, %v2538_v10 }
 0x68e   : > { %v1666_v32 = vadd.f32 1e-05, %v1665_v30 }
 0x690   : > { %2064 = vrsqrt.f32 %v1666_v32  ;;  %vm1673_vm14 = vweird.f32 %v1666_v32 }
 0x696   : > { %v2065_v34 = vpop.eup %2064 }
 0x697   : > { %v1668_v35 = vmul.f32 %v2065_v34, %v1666_v32  ;;  %vm1674_vm9 = vweird.f32 %v2065_v34 }
 0x698   : > { %vm1675_vm15 = vmor %vm1673_vm14, %vm1674_vm9 }
 0x699   : > { %v1669_v36 = vmul.f32 %v2065_v34, %v1668_v35 }
 0x69b   : > { %v1670_v37 = vmul.f32 0.5, %v1669_v36 }
 0x69d   : > { %v1671_v38 = vsub.f32 1.5, %v1670_v37 }
 0x69f   : > { %v1672_v10 = vmul.f32 %v2065_v34, %v1671_v38 }
 0x6a1   : > { %v1676_v28 = vsel %vm1675_vm15, %v2065_v34, %v1672_v10 }
 0x6a2   : > { %v1677_v26 = vmul.f32 %v1676_v28, %v1660_v15 }
 0x6a4   : > { %v1681_v41 = vmul.f32 %v2038_v39, %v1677_v26 }
 0x6a6   : > { %v1685_v42 = vadd.f32 %v2039_v40, %v1681_v41 }
 0x6a8   : > { %1931 = vmatmul.msk.f32.vlgmr.msra.gmra.mxu1 %vm679_vm0, %v1685_v42 }
 0x725   : > { %v1714_v0 = vpop.f32.mrf.mxu1 }
 0x726   : > { %v1715_v47 = vadd.f32 %v2040_v46, %v1714_v0 }
 0x728   : > { %v1717_v18 = vmax.f32 %v1715_v47, 0.0 }
 0x72a   : > { %1932 = vmatmul.msk.f32.vlgmr.msra.gmra.mxu2 %vm1730_vm1, %v1717_v18 }
 0x7ad   : > { %v1751_v63 = vpop.f32.mrf.mxu2 }
 0x7ae   : > { %v1752_v49 = vadd.f32 %v2041_v48, %v1751_v63 }
 0x7b0   : > { %v1754_v51 = vadd.f32 %v1752_v49, %v2832_v11 }
 0x7b2   : > { %1755 = vst.msk [vmem:[%s670_s18] sm:$0xff] %vm679_vm0, %v1754_v51 }
 0x7b3   : > { %2214 = shalt.err (!%p2211_p1)
}
 0x7b4   : > { %1947 = dma.vmem_to_hbm [thread:$0]  (%p2432_p8), %s1771_s20, 128, %s1773_s13, %s1757_s0  }
 0x7b5 PF: > { %s2989_s11 = sld [smem:[#allocation17_spill]]  ;;  %p1964_p2 = pnand %p1906_p10, %p2439_p9 }
 0x7b6   : > { %s2991_s23 = sld [smem:[#allocation20_spill]] }
 0x7b7   : > { %p1965_p4 = pneg %p1964_p2 }
 0x7bb   : > { %s1784_s30 = sand.u32 1, %s2989_s11  }
 0x7bc   : > { %s1785_s9 = scalar_lea.sflag [#allocation6], %s1784_s30 }
 0x7bd   : > { %2252 = dma.done.wait (%p1965_p4), %s1785_s9, 128  }
 0x7be   : > { %2254 = vsyncadd (%p1965_p4), %s1785_s9, 4294967168  ;;  %s37_s29 = sadd.s32 1, %s2991_s23   ;;  %s2992_s6 = sld [smem:[#allocation18_spill]] }
 0x7bf   : > { %p34_p5 = scmp.ge.s32.totalorder %s37_s29, 4   ;;  %s2993_s26 = sld [smem:[#allocation24_spill]] }
 0x7c0   : > { %s2994_s12 = sld [smem:[#allocation21_spill]]  ;;  %s2995_s24 = smov %s2261_s25 }
 0x7c1   : > { %s2997_s27 = smov %s2273_s28 }
 0x7c2   :  { %36 = sbr.rel (!%p34_p5) target bundleno = 22 (0x16), region = 165 }
 0x7c4   : > { %s2996_s25 = smov %s2992_s6 }
 0x7c6   : > { %s2998_s28 = smov %s2994_s12 }
 0x7c7   :  { %1791 = vsyncpa [#allocation5], 1 }
 0x7c8   :  { %1793 = vsyncpa [#allocation5 + $0x1], 1 }
 0x7c9   :  { %1794 = vsyncpa [#allocation8], 1 }
 0x7ca   :  { %1796 = vsyncpa [#allocation8 + $0x1], 1 }
 0x7cb   :  { %1797 = vsyncpa [#allocation11], 1 }
 0x7cc   :  { %1798 = vsyncpa [#allocation6], 1 }
 0x7cd   :  { %1800 = vsyncpa [#allocation6 + $0x1], 1 }

</bundles_post_ra>
